<compile_context>
chip_gen: v7x
topology: tpu7x:2x2x1
jax: 0.10.0
libtpu: 0.0.40
codegen_flags: <defaults>
</compile_context>

<pallas_src>
import functools
import math

import jax
import jax.numpy as jnp
from jax.scipy.special import erf as _erf
from jax.experimental import pallas as pl
from jax.experimental.pallas import tpu as pltpu


# ----------------------------- in-kernel helpers -----------------------------

_GELU_C = math.sqrt(2.0 / math.pi)


def _layer_norm(x, gamma, beta, eps):
    mean = jnp.mean(x, axis=-1, keepdims=True)
    xc = x - mean
    var = jnp.mean(xc * xc, axis=-1, keepdims=True)
    return xc * jax.lax.rsqrt(var + eps) * gamma + beta


def _gelu_tanh(x):
    # tanh-approx GELU: single EUP tanh + a few VPU ops (vs ~10-op erf poly).
    return 0.5 * x * (1.0 + jnp.tanh(_GELU_C * (x + 0.044715 * x * x * x)))


# --------------------------------- kernel ------------------------------------

def bsarec_layer_kernel(x_ref, mask_ref, lpb_ref,
                        w_qkv_ref, b_qkv_ref, w_o_ref, b_o_ref,
                        ln1_g_ref, ln1_b_ref,
                        beta_ref, lnf_g_ref, lnf_b_ref,
                        w1_ref, b1_ref, w2_ref, b2_ref,
                        ln2_g_ref, ln2_b_ref,
                        out_ref, act_ref,
                        *, bb, seq_len, n_heads, head_dim,
                        ln_eps, filter_eps, alpha):
    layer = pl.program_id(1)
    S = seq_len
    H = n_heads * head_dim
    rows = bb * S

    # First layer: load the input slab into the resident f32 activation.
    @pl.when(layer == 0)
    def _():
        act_ref[...] = x_ref[...].astype(jnp.float32)

    x = act_ref[...]                          # (rows, H) f32, resident across layers
    xb = x.astype(jnp.bfloat16)

    # --- fused QKV projection (1/sqrt(d) folded into Q weights host-side) ---
    qkv = jnp.dot(xb, w_qkv_ref[...],
                  preferred_element_type=jnp.float32) + b_qkv_ref[...]

    mask = mask_ref[...]                      # (S, S) additive mask, f32

    # --- attention: per-head QK^T / PV batched over the batch block ---
    ctx_heads = []
    for h in range(n_heads):
        lo = h * head_dim
        qh = qkv[:, lo:lo + head_dim].reshape(bb, S, head_dim).astype(jnp.bfloat16)
        kh = qkv[:, H + lo:H + lo + head_dim].reshape(bb, S, head_dim).astype(jnp.bfloat16)
        vh = qkv[:, 2 * H + lo:2 * H + lo + head_dim].reshape(bb, S, head_dim).astype(jnp.bfloat16)

        scores = jnp.einsum('bqd,bkd->bqk', qh, kh,
                            preferred_element_type=jnp.float32)      # (bb,S,S) f32
        scores = scores + mask[None, :, :]
        scores = scores - jnp.max(scores, axis=-1, keepdims=True)
        p = jnp.exp(scores)
        denom = jnp.sum(p, axis=-1, keepdims=True)
        ctx = jnp.einsum('bqk,bkd->bqd', p.astype(jnp.bfloat16), vh,
                         preferred_element_type=jnp.float32)         # (bb,S,d) f32
        # normalize after PV (EUP reciprocal, applied to the small (bb,S,d) ctx)
        ctx = ctx * pl.reciprocal(denom, approx=True)
        ctx_heads.append(ctx.reshape(rows, head_dim))

    ctx_all = jnp.concatenate(ctx_heads, axis=-1)                    # (rows, H)
    attn = jnp.dot(ctx_all.astype(jnp.bfloat16), w_o_ref[...],
                   preferred_element_type=jnp.float32) + b_o_ref[...]
    h1 = _layer_norm(attn + x, ln1_g_ref[...], ln1_b_ref[...], ln_eps)

    # --- FrequencyLayer on the layer input: block-diagonal low-pass matmul ---
    low = jnp.dot(lpb_ref[...], x, preferred_element_type=jnp.float32)
    high = x - low
    semb = low + beta_ref[...] * high                                # beta = sqrt_beta**2
    dsp = _layer_norm(semb + x, lnf_g_ref[...], lnf_b_ref[...], filter_eps)

    hidden = alpha * dsp + (1.0 - alpha) * h1

    # --- point-wise feed-forward (tanh GELU) ---
    ff = jnp.dot(hidden.astype(jnp.bfloat16), w1_ref[...],
                 preferred_element_type=jnp.float32) + b1_ref[...]
    ff = _gelu_tanh(ff)
    ff = jnp.dot(ff.astype(jnp.bfloat16), w2_ref[...],
                 preferred_element_type=jnp.float32) + b2_ref[...]
    out = _layer_norm(ff + hidden, ln2_g_ref[...], ln2_b_ref[...], ln_eps)

    act_ref[...] = out                       # carry to the next layer (resident)
    out_ref[...] = out.astype(out_ref.dtype)  # per-layer output


# --------------------------------- wrappers -----------------------------------

def lowpass_matrix(seq_len, c):
    """Linear operator equivalent to rfft(dim=seq) -> zero freqs>=c -> irfft."""
    eye = jnp.eye(seq_len, dtype=jnp.float32)
    freq = jnp.fft.rfft(eye, axis=0, norm="ortho")
    keep = (jnp.arange(freq.shape[0]) < c)[:, None]
    freq = jnp.where(keep, freq, jnp.zeros_like(freq))
    proj = jnp.fft.irfft(freq, n=seq_len, axis=0, norm="ortho")
    return proj.astype(jnp.float32)


def pack_encoder_params(layer_params, n_heads):
    """Stack per-layer params along a leading L axis; bf16 weight matrices;
    fold 1/sqrt(head_dim) into the Q projection; precompute beta."""
    H = layer_params[0]["w_qkv"].shape[0]
    d = H // n_heads
    scale = 1.0 / math.sqrt(d)

    def stack(name):
        return jnp.stack([jnp.asarray(p[name], jnp.float32) for p in layer_params], axis=0)

    qkv_scale = jnp.concatenate(
        [jnp.full((H,), scale, jnp.float32), jnp.ones((2 * H,), jnp.float32)])

    return dict(
        w_qkv=(stack("w_qkv") * qkv_scale).astype(jnp.bfloat16),   # (L, H, 3H)
        b_qkv=stack("b_qkv") * qkv_scale,                          # (L, 1, 3H) f32
        w_o=stack("w_o").astype(jnp.bfloat16),
        b_o=stack("b_o"),
        ln1_g=stack("ln1_g"), ln1_b=stack("ln1_b"),
        beta=stack("sqrt_beta") ** 2,                              # sqrt_beta**2 host-side
        lnf_g=stack("lnf_g"), lnf_b=stack("lnf_b"),
        w1=stack("w1").astype(jnp.bfloat16), b1=stack("b1"),
        w2=stack("w2").astype(jnp.bfloat16), b2=stack("b2"),
        ln2_g=stack("ln2_g"), ln2_b=stack("ln2_b"),
    )


def bsarec_encoder(hidden_states, attention_mask, layer_params, *, n_heads,
                   layer_norm_eps=1e-12, c=4, alpha=0.5, batch_block=None,
                   output_all_encoded_layers=True):
    """attention_mask: shared additive (S, S) mask (0 = keep, -1e4 = drop)."""
    B, S, H = hidden_states.shape
    L = len(layer_params)
    inner = layer_params[0]["w1"].shape[1]
    d = H // n_heads
    bb = B if batch_block is None else batch_block
    assert B % bb == 0, "batch must be divisible by batch_block"
    rows = bb * S

    packed = pack_encoder_params(layer_params, n_heads)
    lp = lowpass_matrix(S, c)
    lpb = jnp.kron(jnp.eye(bb, dtype=jnp.float32), lp)        # block-diag (rows, rows)

    x2 = hidden_states.reshape(B * S, H).astype(jnp.float32)
    mask2 = attention_mask.astype(jnp.float32)

    kernel = functools.partial(
        bsarec_layer_kernel, bb=bb, seq_len=S, n_heads=n_heads, head_dim=d,
        ln_eps=layer_norm_eps, filter_eps=1e-12, alpha=alpha)

    def per_layer(shape):
        return pl.BlockSpec((None,) + shape, lambda i, l: (l,) + (0,) * len(shape))

    in_specs = [
        pl.BlockSpec((rows, H), lambda i, l: (i, 0)),          # activation slab
        pl.BlockSpec((S, S), lambda i, l: (0, 0)),             # shared additive mask
        pl.BlockSpec((rows, rows), lambda i, l: (0, 0)),       # block-diag low-pass
        per_layer((H, 3 * H)), per_layer((1, 3 * H)),          # fused QKV
        per_layer((H, H)), per_layer((1, H)),                  # attn out proj
        per_layer((1, H)), per_layer((1, H)),                  # LN (attention)
        per_layer((1, H)),                                     # beta
        per_layer((1, H)), per_layer((1, H)),                  # LN (frequency)
        per_layer((H, inner)), per_layer((1, inner)),          # FFN dense_1
        per_layer((inner, H)), per_layer((1, H)),              # FFN dense_2
        per_layer((1, H)), per_layer((1, H)),                  # LN (FFN)
    ]

    flops_step = (
        2 * rows * H * (3 * H)                                 # QKV
        + n_heads * bb * (2 * S * S * d) * 2                   # QK^T + PV
        + 2 * rows * H * H                                     # out projection
        + 2 * rows * rows * H                                  # low-pass
        + 2 * rows * H * inner + 2 * rows * inner * H          # FFN
    )
    steps = (B // bb) * L
    weight_bytes = sum(int(v.size) * v.dtype.itemsize for v in packed.values())
    cost = pl.CostEstimate(
        flops=int(steps * flops_step),
        transcendentals=int(steps * (n_heads * bb * S * S + rows * inner)),
        bytes_accessed=int(x2.size * 4 + L * B * S * H * 4
                           + mask2.size * 4 + lpb.size * 4
                           + (B // bb) * weight_bytes),
    )

    out = pl.pallas_call(
        kernel,
        out_shape=jax.ShapeDtypeStruct((L, B * S, H), jnp.float32),
        grid_spec=pltpu.PrefetchScalarGridSpec(
            num_scalar_prefetch=0,
            grid=(B // bb, L),
            in_specs=in_specs,
            out_specs=pl.BlockSpec((None, rows, H), lambda i, l: (l, i, 0)),
            scratch_shapes=[pltpu.VMEM((rows, H), jnp.float32)]),
        compiler_params=pltpu.CompilerParams(
            dimension_semantics=("parallel", "arbitrary")),
        cost_estimate=cost,
    )(x2, mask2, lpb,
      packed["w_qkv"], packed["b_qkv"], packed["w_o"], packed["b_o"],
      packed["ln1_g"], packed["ln1_b"], packed["beta"],
      packed["lnf_g"], packed["lnf_b"],
      packed["w1"], packed["b1"], packed["w2"], packed["b2"],
      packed["ln2_g"], packed["ln2_b"])

    outs = [out[l].reshape(B, S, H).astype(hidden_states.dtype) for l in range(L)]
    return outs if output_all_encoded_layers else [outs[-1]]


# ------------------------------ pure-JAX reference ----------------------------

def reference_encoder(hidden_states, attention_mask, layer_params, *, n_heads,
                      layer_norm_eps=1e-12, c=4, alpha=0.5):
    """Pure-JAX reference for the BSARec encoder forward pass.

    Matmul operands are cast to bf16 with f32 accumulation to mirror the
    kernel's MXU precision policy; softmax / LayerNorm statistics and the FFT
    low-pass filter stay in f32.  GELU is the exact erf form of the module.
    """
    def mm(a, b):
        return jax.lax.dot_general(
            a.astype(jnp.bfloat16), b.astype(jnp.bfloat16),
            (((a.ndim - 1,), (0,)), ((), ())),
            preferred_element_type=jnp.float32)

    def ln(v, g, b, eps):
        m = jnp.mean(v, axis=-1, keepdims=True)
        var = jnp.mean((v - m) ** 2, axis=-1, keepdims=True)
        return (v - m) / jnp.sqrt(var + eps) * g + b

    outs = []
    h = hidden_states.astype(jnp.float32)
    B, S, H = h.shape
    d = H // n_heads
    for p in layer_params:
        qkv = mm(h, p["w_qkv"]) + p["b_qkv"][0]
        q, k, v = jnp.split(qkv, 3, axis=-1)

        def heads(t):
            return t.reshape(B, S, n_heads, d).transpose(0, 2, 1, 3)

        qh, kh, vh = heads(q), heads(k), heads(v)
        scores = jnp.einsum("bhqd,bhkd->bhqk",
                            qh.astype(jnp.bfloat16), kh.astype(jnp.bfloat16),
                            preferred_element_type=jnp.float32) / math.sqrt(d)
        scores = scores + attention_mask[None, None, :, :]
        scores = scores - jnp.max(scores, axis=-1, keepdims=True)
        e = jnp.exp(scores)
        probs = e / jnp.sum(e, axis=-1, keepdims=True)
        ctx = jnp.einsum("bhqk,bhkd->bhqd",
                         probs.astype(jnp.bfloat16), vh.astype(jnp.bfloat16),
                         preferred_element_type=jnp.float32)
        ctx = ctx.transpose(0, 2, 1, 3).reshape(B, S, H)
        attn = mm(ctx, p["w_o"]) + p["b_o"][0]
        h1 = ln(attn + h, p["ln1_g"][0], p["ln1_b"][0], layer_norm_eps)

        freq = jnp.fft.rfft(h, axis=1, norm="ortho")
        idx = jnp.arange(freq.shape[1])[None, :, None]
        freq = jnp.where(idx < c, freq, jnp.zeros_like(freq))
        low = jnp.fft.irfft(freq, n=S, axis=1, norm="ortho")
        high = h - low
        semb = low + (p["sqrt_beta"][0] ** 2) * high
        dsp = ln(semb + h, p["lnf_g"][0], p["lnf_b"][0], 1e-12)

        hid = alpha * dsp + (1.0 - alpha) * h1

        ff = mm(hid, p["w1"]) + p["b1"][0]
        ff = 0.5 * ff * (1.0 + _erf(ff / math.sqrt(2.0)))
        ff = mm(ff, p["w2"]) + p["b2"][0]
        h = ln(ff + hid, p["ln2_g"][0], p["ln2_b"][0], layer_norm_eps)
        outs.append(h)
    return outs


# ------------------------------------ main ------------------------------------

if __name__ == "__main__":
    B, S, H, INNER = 2, 16, 32, 64
    N_HEADS, N_LAYERS = 2, 2
    LN_EPS = 1e-12

    root = jax.random.PRNGKey(0)
    k_x, k_params = jax.random.split(root)

    x = jax.random.normal(k_x, (B, S, H), jnp.float32)

    # Shared causal additive attention mask: 0 where allowed, -10000 otherwise.
    causal = jnp.tril(jnp.ones((S, S), jnp.float32))
    mask = (1.0 - causal) * -10000.0

    def make_layer(key):
        ks = jax.random.split(key, 15)
        g = lambda k, shape, scale: scale * jax.random.normal(k, shape, jnp.float32)
        return dict(
            w_qkv=g(ks[0], (H, 3 * H), 1.0 / math.sqrt(H)),
            b_qkv=g(ks[1], (1, 3 * H), 0.02),
            w_o=g(ks[2], (H, H), 1.0 / math.sqrt(H)),
            b_o=g(ks[3], (1, H), 0.02),
            ln1_g=1.0 + g(ks[4], (1, H), 0.05),
            ln1_b=g(ks[5], (1, H), 0.05),
            sqrt_beta=g(ks[6], (1, H), 0.5),
            lnf_g=1.0 + g(ks[7], (1, H), 0.05),
            lnf_b=g(ks[8], (1, H), 0.05),
            w1=g(ks[9], (H, INNER), 1.0 / math.sqrt(H)),
            b1=g(ks[10], (1, INNER), 0.02),
            w2=g(ks[11], (INNER, H), 1.0 / math.sqrt(INNER)),
            b2=g(ks[12], (1, H), 0.02),
            ln2_g=1.0 + g(ks[13], (1, H), 0.05),
            ln2_b=g(ks[14], (1, H), 0.05),
        )

    layer_params = [make_layer(k) for k in jax.random.split(k_params, N_LAYERS)]

    outs = bsarec_encoder(x, mask, layer_params, n_heads=N_HEADS,
                          layer_norm_eps=LN_EPS,
                          output_all_encoded_layers=True)
    outs = jax.block_until_ready(outs)

    refs = reference_encoder(x, mask, layer_params, n_heads=N_HEADS,
                             layer_norm_eps=LN_EPS)

    assert len(outs) == N_LAYERS
    for o, r in zip(outs, refs):
        assert o.shape == (B, S, H)
        # bf16 matmul operands + tanh-GELU + approx reciprocal -> ~1e-2 scale
        # deviations vs the (bf16-matched) reference are expected.
        assert jnp.allclose(o, r, atol=2e-2, rtol=2e-2), (
            "mismatch vs reference, max abs diff = %f"
            % float(jnp.max(jnp.abs(o - r))))

    print("KERNEL_OK")
</pallas_src>

<mosaic_0001>
module attributes {stable_mosaic.version = 11 : i64} {
  func.func @bsarec_layer_kernel(%arg0: i32, %arg1: i32, %arg2: memref<32x32xf32, #tpu.memory_space<vmem>>, %arg3: memref<16x16xf32, #tpu.memory_space<vmem>>, %arg4: memref<32x32xf32, #tpu.memory_space<vmem>>, %arg5: memref<1x32x96xbf16, #tpu.memory_space<vmem>>, %arg6: memref<1x1x96xf32, #tpu.memory_space<vmem>>, %arg7: memref<1x32x32xbf16, #tpu.memory_space<vmem>>, %arg8: memref<1x1x32xf32, #tpu.memory_space<vmem>>, %arg9: memref<1x1x32xf32, #tpu.memory_space<vmem>>, %arg10: memref<1x1x32xf32, #tpu.memory_space<vmem>>, %arg11: memref<1x1x32xf32, #tpu.memory_space<vmem>>, %arg12: memref<1x1x32xf32, #tpu.memory_space<vmem>>, %arg13: memref<1x1x32xf32, #tpu.memory_space<vmem>>, %arg14: memref<1x32x64xbf16, #tpu.memory_space<vmem>>, %arg15: memref<1x1x64xf32, #tpu.memory_space<vmem>>, %arg16: memref<1x64x32xbf16, #tpu.memory_space<vmem>>, %arg17: memref<1x1x32xf32, #tpu.memory_space<vmem>>, %arg18: memref<1x1x32xf32, #tpu.memory_space<vmem>>, %arg19: memref<1x1x32xf32, #tpu.memory_space<vmem>>, %arg20: memref<1x32x32xf32, #tpu.memory_space<vmem>>, %arg21: memref<32x32xf32, #tpu.memory_space<vmem>>) attributes {dimension_semantics = [#tpu.dimension_semantics<parallel>, #tpu.dimension_semantics<arbitrary>], iteration_bounds = array<i64: 1, 2>, scalar_prefetch = 0 : i64, scratch_operands = 1 : i64, tpu.core_type = #tpu.core_type<tc>, window_params = [{transform_indices = @transform_0, window_bounds = array<i64: 32, 32>}, {pipeline_mode = #tpu.pipeline_mode<synchronous>, transform_indices = @transform_1, window_bounds = array<i64: 16, 16>}, {pipeline_mode = #tpu.pipeline_mode<synchronous>, transform_indices = @transform_2, window_bounds = array<i64: 32, 32>}, {transform_indices = @transform_3, window_bounds = array<i64: 1, 32, 96>}, {transform_indices = @transform_4, window_bounds = array<i64: 1, 1, 96>}, {transform_indices = @transform_5, window_bounds = array<i64: 1, 32, 32>}, {transform_indices = @transform_6, window_bounds = array<i64: 1, 1, 32>}, {transform_indices = @transform_7, window_bounds = array<i64: 1, 1, 32>}, {transform_indices = @transform_8, window_bounds = array<i64: 1, 1, 32>}, {transform_indices = @transform_9, window_bounds = array<i64: 1, 1, 32>}, {transform_indices = @transform_10, window_bounds = array<i64: 1, 1, 32>}, {transform_indices = @transform_11, window_bounds = array<i64: 1, 1, 32>}, {transform_indices = @transform_12, window_bounds = array<i64: 1, 32, 64>}, {transform_indices = @transform_13, window_bounds = array<i64: 1, 1, 64>}, {transform_indices = @transform_14, window_bounds = array<i64: 1, 64, 32>}, {transform_indices = @transform_15, window_bounds = array<i64: 1, 1, 32>}, {transform_indices = @transform_16, window_bounds = array<i64: 1, 1, 32>}, {transform_indices = @transform_17, window_bounds = array<i64: 1, 1, 32>}, {transform_indices = @transform_18, window_bounds = array<i64: 1, 32, 32>}]} {
    %c0_i32 = arith.constant 0 : i32
    %0 = arith.cmpi eq, %arg1, %c0_i32 : i32
    %1 = arith.extui %0 : i1 to i32
    %c0_i32_0 = arith.constant 0 : i32
    %2 = arith.cmpi ne, %1, %c0_i32_0 : i32
    scf.if %2 {
      %c0_89 = arith.constant 0 : index
      %c0_90 = arith.constant 0 : index
      %195 = vector.load %arg2[%c0_89, %c0_90] : memref<32x32xf32, #tpu.memory_space<vmem>>, vector<32x32xf32>
      %c0_91 = arith.constant 0 : index
      %c0_92 = arith.constant 0 : index
      %196 = vector.load %arg21[%c0_91, %c0_92] : memref<32x32xf32, #tpu.memory_space<vmem>>, vector<32x32xf32>
      tpu.vector_store %arg21[%c0_91, %c0_92], %195 {strides = array<i32>} : memref<32x32xf32, #tpu.memory_space<vmem>>, vector<32x32xf32>,
    } else {
    }
    %c0 = arith.constant 0 : index
    %c0_1 = arith.constant 0 : index
    %3 = vector.load %arg21[%c0, %c0_1] : memref<32x32xf32, #tpu.memory_space<vmem>>, vector<32x32xf32>
    %4 = arith.truncf %3 : vector<32x32xf32> to vector<32x32xbf16>
    %c0_2 = arith.constant 0 : index
    %c0_3 = arith.constant 0 : index
    %c0_4 = arith.constant 0 : index
    %5 = vector.load %arg5[%c0_2, %c0_3, %c0_4] : memref<1x32x96xbf16, #tpu.memory_space<vmem>>, vector<1x32x96xbf16>
    %6 = vector.shape_cast %5 : vector<1x32x96xbf16> to vector<32x96xbf16>
    %cst = arith.constant dense<0.000000e+00> : vector<32x96xf32>
    %7 = tpu.matmul %4, %6, %cst {dimension_numbers = #tpu.dot_dimension_numbers<[1], [0], [0], [1], [0, 0, 1, 1], [], []>} : vector<32x32xbf16>, vector<32x96xbf16>, vector<32x96xf32> -> vector<32x96xf32>
    %c0_5 = arith.constant 0 : index
    %c0_6 = arith.constant 0 : index
    %c0_7 = arith.constant 0 : index
    %8 = vector.load %arg6[%c0_5, %c0_6, %c0_7] : memref<1x1x96xf32, #tpu.memory_space<vmem>>, vector<1x1x96xf32>
    %9 = vector.shape_cast %8 : vector<1x1x96xf32> to vector<1x96xf32>
    %10 = vector.broadcast %9 : vector<1x96xf32> to vector<32x96xf32>
    %11 = arith.addf %7, %10 : vector<32x96xf32>
    %c0_8 = arith.constant 0 : index
    %c0_9 = arith.constant 0 : index
    %12 = vector.load %arg3[%c0_8, %c0_9] : memref<16x16xf32, #tpu.memory_space<vmem>>, vector<16x16xf32>
    %13 = vector.extract_strided_slice %11 {offsets = [0, 0], sizes = [32, 16], strides = [1, 1]} : vector<32x96xf32> to vector<32x16xf32>
    %14 = vector.shape_cast %13 : vector<32x16xf32> to vector<2x16x16xf32>
    %15 = arith.truncf %14 : vector<2x16x16xf32> to vector<2x16x16xbf16>
    %16 = vector.extract_strided_slice %11 {offsets = [0, 32], sizes = [32, 16], strides = [1, 1]} : vector<32x96xf32> to vector<32x16xf32>
    %17 = vector.shape_cast %16 : vector<32x16xf32> to vector<2x16x16xf32>
    %18 = arith.truncf %17 : vector<2x16x16xf32> to vector<2x16x16xbf16>
    %19 = vector.extract_strided_slice %11 {offsets = [0, 64], sizes = [32, 16], strides = [1, 1]} : vector<32x96xf32> to vector<32x16xf32>
    %20 = vector.shape_cast %19 : vector<32x16xf32> to vector<2x16x16xf32>
    %21 = arith.truncf %20 : vector<2x16x16xf32> to vector<2x16x16xbf16>
    "tpu.trace_start"() <{level = 10 : i32, message = "bqd,bkd->bqk"}> : () -> ()
    %cst_10 = arith.constant dense<0.000000e+00> : vector<2x16x16xf32>
    %22 = tpu.matmul %15, %18, %cst_10 {dimension_numbers = #tpu.dot_dimension_numbers<[2], [2], [1], [1], [0, 0, 0, 1, 1, 1], [0], [0]>} : vector<2x16x16xbf16>, vector<2x16x16xbf16>, vector<2x16x16xf32> -> vector<2x16x16xf32>
    "tpu.trace_stop"() : () -> ()
    %23 = vector.shape_cast %12 : vector<16x16xf32> to vector<1x16x16xf32>
    %24 = vector.broadcast %23 : vector<1x16x16xf32> to vector<2x16x16xf32>
    %25 = arith.addf %22, %24 : vector<2x16x16xf32>
    %cst_11 = arith.constant dense<0xFF800000> : vector<2x16xf32>
    %26 = vector.multi_reduction <maximumf>, %25, %cst_11 [2] : vector<2x16x16xf32> to vector<2x16xf32>
    %27 = vector.shape_cast %26 : vector<2x16xf32> to vector<2x16x1xf32>
    %28 = vector.broadcast %27 : vector<2x16x1xf32> to vector<2x16x16xf32>
    %29 = arith.subf %25, %28 : vector<2x16x16xf32>
    %30 = math.exp %29 : vector<2x16x16xf32>
    %cst_12 = arith.constant dense<0.000000e+00> : vector<2x16xf32>
    %31 = vector.multi_reduction <add>, %30, %cst_12 [2] : vector<2x16x16xf32> to vector<2x16xf32>
    %32 = vector.shape_cast %31 : vector<2x16xf32> to vector<2x16x1xf32>
    %33 = arith.truncf %30 : vector<2x16x16xf32> to vector<2x16x16xbf16>
    "tpu.trace_start"() <{level = 10 : i32, message = "bqk,bkd->bqd"}> : () -> ()
    %cst_13 = arith.constant dense<0.000000e+00> : vector<2x16x16xf32>
    %34 = tpu.matmul %33, %21, %cst_13 {dimension_numbers = #tpu.dot_dimension_numbers<[2], [1], [1], [2], [0, 0, 0, 1, 1, 2], [0], [0]>} : vector<2x16x16xbf16>, vector<2x16x16xbf16>, vector<2x16x16xf32> -> vector<2x16x16xf32>
    "tpu.trace_stop"() : () -> ()
    %35 = tpu.reciprocal %32 {approx = true} : vector<2x16x1xf32> -> vector<2x16x1xf32>
    %36 = vector.broadcast %35 : vector<2x16x1xf32> to vector<2x16x16xf32>
    %37 = arith.mulf %34, %36 : vector<2x16x16xf32>
    %38 = vector.shape_cast %37 : vector<2x16x16xf32> to vector<32x16xf32>
    %39 = vector.extract_strided_slice %11 {offsets = [0, 16], sizes = [32, 16], strides = [1, 1]} : vector<32x96xf32> to vector<32x16xf32>
    %40 = vector.shape_cast %39 : vector<32x16xf32> to vector<2x16x16xf32>
    %41 = arith.truncf %40 : vector<2x16x16xf32> to vector<2x16x16xbf16>
    %42 = vector.extract_strided_slice %11 {offsets = [0, 48], sizes = [32, 16], strides = [1, 1]} : vector<32x96xf32> to vector<32x16xf32>
    %43 = vector.shape_cast %42 : vector<32x16xf32> to vector<2x16x16xf32>
    %44 = arith.truncf %43 : vector<2x16x16xf32> to vector<2x16x16xbf16>
    %45 = vector.extract_strided_slice %11 {offsets = [0, 80], sizes = [32, 16], strides = [1, 1]} : vector<32x96xf32> to vector<32x16xf32>
    %46 = vector.shape_cast %45 : vector<32x16xf32> to vector<2x16x16xf32>
    %47 = arith.truncf %46 : vector<2x16x16xf32> to vector<2x16x16xbf16>
    "tpu.trace_start"() <{level = 10 : i32, message = "bqd,bkd->bqk"}> : () -> ()
    %cst_14 = arith.constant dense<0.000000e+00> : vector<2x16x16xf32>
    %48 = tpu.matmul %41, %44, %cst_14 {dimension_numbers = #tpu.dot_dimension_numbers<[2], [2], [1], [1], [0, 0, 0, 1, 1, 1], [0], [0]>} : vector<2x16x16xbf16>, vector<2x16x16xbf16>, vector<2x16x16xf32> -> vector<2x16x16xf32>
    "tpu.trace_stop"() : () -> ()
    %49 = vector.shape_cast %12 : vector<16x16xf32> to vector<1x16x16xf32>
    %50 = vector.broadcast %49 : vector<1x16x16xf32> to vector<2x16x16xf32>
    %51 = arith.addf %48, %50 : vector<2x16x16xf32>
    %cst_15 = arith.constant dense<0xFF800000> : vector<2x16xf32>
    %52 = vector.multi_reduction <maximumf>, %51, %cst_15 [2] : vector<2x16x16xf32> to vector<2x16xf32>
    %53 = vector.shape_cast %52 : vector<2x16xf32> to vector<2x16x1xf32>
    %54 = vector.broadcast %53 : vector<2x16x1xf32> to vector<2x16x16xf32>
    %55 = arith.subf %51, %54 : vector<2x16x16xf32>
    %56 = math.exp %55 : vector<2x16x16xf32>
    %cst_16 = arith.constant dense<0.000000e+00> : vector<2x16xf32>
    %57 = vector.multi_reduction <add>, %56, %cst_16 [2] : vector<2x16x16xf32> to vector<2x16xf32>
    %58 = vector.shape_cast %57 : vector<2x16xf32> to vector<2x16x1xf32>
    %59 = arith.truncf %56 : vector<2x16x16xf32> to vector<2x16x16xbf16>
    "tpu.trace_start"() <{level = 10 : i32, message = "bqk,bkd->bqd"}> : () -> ()
    %cst_17 = arith.constant dense<0.000000e+00> : vector<2x16x16xf32>
    %60 = tpu.matmul %59, %47, %cst_17 {dimension_numbers = #tpu.dot_dimension_numbers<[2], [1], [1], [2], [0, 0, 0, 1, 1, 2], [0], [0]>} : vector<2x16x16xbf16>, vector<2x16x16xbf16>, vector<2x16x16xf32> -> vector<2x16x16xf32>
    "tpu.trace_stop"() : () -> ()
    %61 = tpu.reciprocal %58 {approx = true} : vector<2x16x1xf32> -> vector<2x16x1xf32>
    %62 = vector.broadcast %61 : vector<2x16x1xf32> to vector<2x16x16xf32>
    %63 = arith.mulf %60, %62 : vector<2x16x16xf32>
    %64 = vector.shape_cast %63 : vector<2x16x16xf32> to vector<32x16xf32>
    %65 = tpu.concatenate %38, %64 in 1 : vector<32x16xf32>, vector<32x16xf32> -> vector<32x32xf32>
    %66 = arith.truncf %65 : vector<32x32xf32> to vector<32x32xbf16>
    %c0_18 = arith.constant 0 : index
    %c0_19 = arith.constant 0 : index
    %c0_20 = arith.constant 0 : index
    %67 = vector.load %arg7[%c0_18, %c0_19, %c0_20] : memref<1x32x32xbf16, #tpu.memory_space<vmem>>, vector<1x32x32xbf16>
    %68 = vector.shape_cast %67 : vector<1x32x32xbf16> to vector<32x32xbf16>
    %cst_21 = arith.constant dense<0.000000e+00> : vector<32x32xf32>
    %69 = tpu.matmul %66, %68, %cst_21 {dimension_numbers = #tpu.dot_dimension_numbers<[1], [0], [0], [1], [0, 0, 1, 1], [], []>} : vector<32x32xbf16>, vector<32x32xbf16>, vector<32x32xf32> -> vector<32x32xf32>
    %c0_22 = arith.constant 0 : index
    %c0_23 = arith.constant 0 : index
    %c0_24 = arith.constant 0 : index
    %70 = vector.load %arg8[%c0_22, %c0_23, %c0_24] : memref<1x1x32xf32, #tpu.memory_space<vmem>>, vector<1x1x32xf32>
    %71 = vector.shape_cast %70 : vector<1x1x32xf32> to vector<1x32xf32>
    %72 = vector.broadcast %71 : vector<1x32xf32> to vector<32x32xf32>
    %73 = arith.addf %69, %72 : vector<32x32xf32>
    %74 = arith.addf %73, %3 : vector<32x32xf32>
    %c0_25 = arith.constant 0 : index
    %c0_26 = arith.constant 0 : index
    %c0_27 = arith.constant 0 : index
    %75 = vector.load %arg9[%c0_25, %c0_26, %c0_27] : memref<1x1x32xf32, #tpu.memory_space<vmem>>, vector<1x1x32xf32>
    %76 = vector.shape_cast %75 : vector<1x1x32xf32> to vector<1x32xf32>
    %c0_28 = arith.constant 0 : index
    %c0_29 = arith.constant 0 : index
    %c0_30 = arith.constant 0 : index
    %77 = vector.load %arg10[%c0_28, %c0_29, %c0_30] : memref<1x1x32xf32, #tpu.memory_space<vmem>>, vector<1x1x32xf32>
    %78 = vector.shape_cast %77 : vector<1x1x32xf32> to vector<1x32xf32>
    %cst_31 = arith.constant dense<0.000000e+00> : vector<32xf32>
    %79 = vector.multi_reduction <add>, %74, %cst_31 [1] : vector<32x32xf32> to vector<32xf32>
    %80 = vector.shape_cast %79 : vector<32xf32> to vector<32x1xf32>
    %cst_32 = arith.constant 3.200000e+01 : f32
    %81 = vector.broadcast %cst_32 : f32 to vector<32x1xf32>
    %82 = arith.divf %80, %81 : vector<32x1xf32>
    %83 = vector.broadcast %82 : vector<32x1xf32> to vector<32x32xf32>
    %84 = arith.subf %74, %83 : vector<32x32xf32>
    %85 = arith.mulf %84, %84 : vector<32x32xf32>
    %cst_33 = arith.constant dense<0.000000e+00> : vector<32xf32>
    %86 = vector.multi_reduction <add>, %85, %cst_33 [1] : vector<32x32xf32> to vector<32xf32>
    %87 = vector.shape_cast %86 : vector<32xf32> to vector<32x1xf32>
    %cst_34 = arith.constant 3.200000e+01 : f32
    %88 = vector.broadcast %cst_34 : f32 to vector<32x1xf32>
    %89 = arith.divf %87, %88 : vector<32x1xf32>
    %cst_35 = arith.constant 9.99999996E-13 : f32
    %90 = vector.broadcast %cst_35 : f32 to vector<32x1xf32>
    %91 = arith.addf %89, %90 : vector<32x1xf32>
    %92 = math.rsqrt %91 : vector<32x1xf32>
    %93 = vector.broadcast %92 : vector<32x1xf32> to vector<32x32xf32>
    %94 = arith.mulf %84, %93 : vector<32x32xf32>
    %95 = vector.broadcast %76 : vector<1x32xf32> to vector<32x32xf32>
    %96 = arith.mulf %94, %95 : vector<32x32xf32>
    %97 = vector.broadcast %78 : vector<1x32xf32> to vector<32x32xf32>
    %98 = arith.addf %96, %97 : vector<32x32xf32>
    %c0_36 = arith.constant 0 : index
    %c0_37 = arith.constant 0 : index
    %99 = vector.load %arg4[%c0_36, %c0_37] : memref<32x32xf32, #tpu.memory_space<vmem>>, vector<32x32xf32>
    %cst_38 = arith.constant dense<0.000000e+00> : vector<32x32xf32>
    %100 = tpu.matmul %99, %3, %cst_38 {dimension_numbers = #tpu.dot_dimension_numbers<[1], [0], [0], [1], [0, 0, 1, 1], [], []>} : vector<32x32xf32>, vector<32x32xf32>, vector<32x32xf32> -> vector<32x32xf32>
    %101 = arith.subf %3, %100 : vector<32x32xf32>
    %c0_39 = arith.constant 0 : index
    %c0_40 = arith.constant 0 : index
    %c0_41 = arith.constant 0 : index
    %102 = vector.load %arg11[%c0_39, %c0_40, %c0_41] : memref<1x1x32xf32, #tpu.memory_space<vmem>>, vector<1x1x32xf32>
    %103 = vector.shape_cast %102 : vector<1x1x32xf32> to vector<1x32xf32>
    %104 = vector.broadcast %103 : vector<1x32xf32> to vector<32x32xf32>
    %105 = arith.mulf %104, %101 : vector<32x32xf32>
    %106 = arith.addf %100, %105 : vector<32x32xf32>
    %107 = arith.addf %106, %3 : vector<32x32xf32>
    %c0_42 = arith.constant 0 : index
    %c0_43 = arith.constant 0 : index
    %c0_44 = arith.constant 0 : index
    %108 = vector.load %arg12[%c0_42, %c0_43, %c0_44] : memref<1x1x32xf32, #tpu.memory_space<vmem>>, vector<1x1x32xf32>
    %109 = vector.shape_cast %108 : vector<1x1x32xf32> to vector<1x32xf32>
    %c0_45 = arith.constant 0 : index
    %c0_46 = arith.constant 0 : index
    %c0_47 = arith.constant 0 : index
    %110 = vector.load %arg13[%c0_45, %c0_46, %c0_47] : memref<1x1x32xf32, #tpu.memory_space<vmem>>, vector<1x1x32xf32>
    %111 = vector.shape_cast %110 : vector<1x1x32xf32> to vector<1x32xf32>
    %cst_48 = arith.constant dense<0.000000e+00> : vector<32xf32>
    %112 = vector.multi_reduction <add>, %107, %cst_48 [1] : vector<32x32xf32> to vector<32xf32>
    %113 = vector.shape_cast %112 : vector<32xf32> to vector<32x1xf32>
    %cst_49 = arith.constant 3.200000e+01 : f32
    %114 = vector.broadcast %cst_49 : f32 to vector<32x1xf32>
    %115 = arith.divf %113, %114 : vector<32x1xf32>
    %116 = vector.broadcast %115 : vector<32x1xf32> to vector<32x32xf32>
    %117 = arith.subf %107, %116 : vector<32x32xf32>
    %118 = arith.mulf %117, %117 : vector<32x32xf32>
    %cst_50 = arith.constant dense<0.000000e+00> : vector<32xf32>
    %119 = vector.multi_reduction <add>, %118, %cst_50 [1] : vector<32x32xf32> to vector<32xf32>
    %120 = vector.shape_cast %119 : vector<32xf32> to vector<32x1xf32>
    %cst_51 = arith.constant 3.200000e+01 : f32
    %121 = vector.broadcast %cst_51 : f32 to vector<32x1xf32>
    %122 = arith.divf %120, %121 : vector<32x1xf32>
    %cst_52 = arith.constant 9.99999996E-13 : f32
    %123 = vector.broadcast %cst_52 : f32 to vector<32x1xf32>
    %124 = arith.addf %122, %123 : vector<32x1xf32>
    %125 = math.rsqrt %124 : vector<32x1xf32>
    %126 = vector.broadcast %125 : vector<32x1xf32> to vector<32x32xf32>
    %127 = arith.mulf %117, %126 : vector<32x32xf32>
    %128 = vector.broadcast %109 : vector<1x32xf32> to vector<32x32xf32>
    %129 = arith.mulf %127, %128 : vector<32x32xf32>
    %130 = vector.broadcast %111 : vector<1x32xf32> to vector<32x32xf32>
    %131 = arith.addf %129, %130 : vector<32x32xf32>
    %cst_53 = arith.constant 5.000000e-01 : f32
    %132 = vector.broadcast %cst_53 : f32 to vector<32x32xf32>
    %133 = arith.mulf %132, %131 : vector<32x32xf32>
    %cst_54 = arith.constant 5.000000e-01 : f32
    %134 = vector.broadcast %cst_54 : f32 to vector<32x32xf32>
    %135 = arith.mulf %134, %98 : vector<32x32xf32>
    %136 = arith.addf %133, %135 : vector<32x32xf32>
    %137 = arith.truncf %136 : vector<32x32xf32> to vector<32x32xbf16>
    %c0_55 = arith.constant 0 : index
    %c0_56 = arith.constant 0 : index
    %c0_57 = arith.constant 0 : index
    %138 = vector.load %arg14[%c0_55, %c0_56, %c0_57] : memref<1x32x64xbf16, #tpu.memory_space<vmem>>, vector<1x32x64xbf16>
    %139 = vector.shape_cast %138 : vector<1x32x64xbf16> to vector<32x64xbf16>
    %cst_58 = arith.constant dense<0.000000e+00> : vector<32x64xf32>
    %140 = tpu.matmul %137, %139, %cst_58 {dimension_numbers = #tpu.dot_dimension_numbers<[1], [0], [0], [1], [0, 0, 1, 1], [], []>} : vector<32x32xbf16>, vector<32x64xbf16>, vector<32x64xf32> -> vector<32x64xf32>
    %c0_59 = arith.constant 0 : index
    %c0_60 = arith.constant 0 : index
    %c0_61 = arith.constant 0 : index
    %141 = vector.load %arg15[%c0_59, %c0_60, %c0_61] : memref<1x1x64xf32, #tpu.memory_space<vmem>>, vector<1x1x64xf32>
    %142 = vector.shape_cast %141 : vector<1x1x64xf32> to vector<1x64xf32>
    %143 = vector.broadcast %142 : vector<1x64xf32> to vector<32x64xf32>
    %144 = arith.addf %140, %143 : vector<32x64xf32>
    %cst_62 = arith.constant 5.000000e-01 : f32
    %145 = vector.broadcast %cst_62 : f32 to vector<32x64xf32>
    %146 = arith.mulf %145, %144 : vector<32x64xf32>
    %cst_63 = arith.constant 4.471500e-02 : f32
    %147 = vector.broadcast %cst_63 : f32 to vector<32x64xf32>
    %148 = arith.mulf %147, %144 : vector<32x64xf32>
    %149 = arith.mulf %148, %144 : vector<32x64xf32>
    %150 = arith.mulf %149, %144 : vector<32x64xf32>
    %151 = arith.addf %144, %150 : vector<32x64xf32>
    %cst_64 = arith.constant 0.797884583 : f32
    %152 = vector.broadcast %cst_64 : f32 to vector<32x64xf32>
    %153 = arith.mulf %152, %151 : vector<32x64xf32>
    %154 = math.tanh %153 : vector<32x64xf32>
    %cst_65 = arith.constant 1.000000e+00 : f32
    %155 = vector.broadcast %cst_65 : f32 to vector<32x64xf32>
    %156 = arith.addf %155, %154 : vector<32x64xf32>
    %157 = arith.mulf %146, %156 : vector<32x64xf32>
    %158 = arith.truncf %157 : vector<32x64xf32> to vector<32x64xbf16>
    %c0_66 = arith.constant 0 : index
    %c0_67 = arith.constant 0 : index
    %c0_68 = arith.constant 0 : index
    %159 = vector.load %arg16[%c0_66, %c0_67, %c0_68] : memref<1x64x32xbf16, #tpu.memory_space<vmem>>, vector<1x64x32xbf16>
    %160 = vector.shape_cast %159 : vector<1x64x32xbf16> to vector<64x32xbf16>
    %cst_69 = arith.constant dense<0.000000e+00> : vector<32x32xf32>
    %161 = tpu.matmul %158, %160, %cst_69 {dimension_numbers = #tpu.dot_dimension_numbers<[1], [0], [0], [1], [0, 0, 1, 1], [], []>} : vector<32x64xbf16>, vector<64x32xbf16>, vector<32x32xf32> -> vector<32x32xf32>
    %c0_70 = arith.constant 0 : index
    %c0_71 = arith.constant 0 : index
    %c0_72 = arith.constant 0 : index
    %162 = vector.load %arg17[%c0_70, %c0_71, %c0_72] : memref<1x1x32xf32, #tpu.memory_space<vmem>>, vector<1x1x32xf32>
    %163 = vector.shape_cast %162 : vector<1x1x32xf32> to vector<1x32xf32>
    %164 = vector.broadcast %163 : vector<1x32xf32> to vector<32x32xf32>
    %165 = arith.addf %161, %164 : vector<32x32xf32>
    %166 = arith.addf %165, %136 : vector<32x32xf32>
    %c0_73 = arith.constant 0 : index
    %c0_74 = arith.constant 0 : index
    %c0_75 = arith.constant 0 : index
    %167 = vector.load %arg18[%c0_73, %c0_74, %c0_75] : memref<1x1x32xf32, #tpu.memory_space<vmem>>, vector<1x1x32xf32>
    %168 = vector.shape_cast %167 : vector<1x1x32xf32> to vector<1x32xf32>
    %c0_76 = arith.constant 0 : index
    %c0_77 = arith.constant 0 : index
    %c0_78 = arith.constant 0 : index
    %169 = vector.load %arg19[%c0_76, %c0_77, %c0_78] : memref<1x1x32xf32, #tpu.memory_space<vmem>>, vector<1x1x32xf32>
    %170 = vector.shape_cast %169 : vector<1x1x32xf32> to vector<1x32xf32>
    %cst_79 = arith.constant dense<0.000000e+00> : vector<32xf32>
    %171 = vector.multi_reduction <add>, %166, %cst_79 [1] : vector<32x32xf32> to vector<32xf32>
    %172 = vector.shape_cast %171 : vector<32xf32> to vector<32x1xf32>
    %cst_80 = arith.constant 3.200000e+01 : f32
    %173 = vector.broadcast %cst_80 : f32 to vector<32x1xf32>
    %174 = arith.divf %172, %173 : vector<32x1xf32>
    %175 = vector.broadcast %174 : vector<32x1xf32> to vector<32x32xf32>
    %176 = arith.subf %166, %175 : vector<32x32xf32>
    %177 = arith.mulf %176, %176 : vector<32x32xf32>
    %cst_81 = arith.constant dense<0.000000e+00> : vector<32xf32>
    %178 = vector.multi_reduction <add>, %177, %cst_81 [1] : vector<32x32xf32> to vector<32xf32>
    %179 = vector.shape_cast %178 : vector<32xf32> to vector<32x1xf32>
    %cst_82 = arith.constant 3.200000e+01 : f32
    %180 = vector.broadcast %cst_82 : f32 to vector<32x1xf32>
    %181 = arith.divf %179, %180 : vector<32x1xf32>
    %cst_83 = arith.constant 9.99999996E-13 : f32
    %182 = vector.broadcast %cst_83 : f32 to vector<32x1xf32>
    %183 = arith.addf %181, %182 : vector<32x1xf32>
    %184 = math.rsqrt %183 : vector<32x1xf32>
    %185 = vector.broadcast %184 : vector<32x1xf32> to vector<32x32xf32>
    %186 = arith.mulf %176, %185 : vector<32x32xf32>
    %187 = vector.broadcast %168 : vector<1x32xf32> to vector<32x32xf32>
    %188 = arith.mulf %186, %187 : vector<32x32xf32>
    %189 = vector.broadcast %170 : vector<1x32xf32> to vector<32x32xf32>
    %190 = arith.addf %188, %189 : vector<32x32xf32>
    %c0_84 = arith.constant 0 : index
    %c0_85 = arith.constant 0 : index
    %191 = vector.load %arg21[%c0_84, %c0_85] : memref<32x32xf32, #tpu.memory_space<vmem>>, vector<32x32xf32>
    tpu.vector_store %arg21[%c0_84, %c0_85], %190 {strides = array<i32>} : memref<32x32xf32, #tpu.memory_space<vmem>>, vector<32x32xf32>,
    %c0_86 = arith.constant 0 : index
    %c0_87 = arith.constant 0 : index
    %c0_88 = arith.constant 0 : index
    %192 = vector.load %arg20[%c0_86, %c0_87, %c0_88] : memref<1x32x32xf32, #tpu.memory_space<vmem>>, vector<1x32x32xf32>
    %193 = vector.shape_cast %192 : vector<1x32x32xf32> to vector<32x32xf32>
    %194 = vector.shape_cast %190 : vector<32x32xf32> to vector<1x32x32xf32>
    tpu.vector_store %arg20[%c0_86, %c0_87, %c0_88], %194 {strides = array<i32>} : memref<1x32x32xf32, #tpu.memory_space<vmem>>, vector<1x32x32xf32>,
    return
  }
  func.func @transform_0(%arg0: i32, %arg1: i32) -> (i32, i32) {
    %c0_i32 = arith.constant 0 : i32
    %c0_i32_0 = arith.constant 0 : i32
    return %arg0, %c0_i32 : i32, i32
  }
  func.func @transform_1(%arg0: i32, %arg1: i32) -> (i32, i32) {
    %c0_i32 = arith.constant 0 : i32
    %c0_i32_0 = arith.constant 0 : i32
    %c0_i32_1 = arith.constant 0 : i32
    return %c0_i32, %c0_i32_0 : i32, i32
  }
  func.func @transform_2(%arg0: i32, %arg1: i32) -> (i32, i32) {
    %c0_i32 = arith.constant 0 : i32
    %c0_i32_0 = arith.constant 0 : i32
    %c0_i32_1 = arith.constant 0 : i32
    return %c0_i32, %c0_i32_0 : i32, i32
  }
  func.func @transform_3(%arg0: i32, %arg1: i32) -> (i32, i32, i32) {
    %c0_i32 = arith.constant 0 : i32
    %c0_i32_0 = arith.constant 0 : i32
    %c0_i32_1 = arith.constant 0 : i32
    return %arg1, %c0_i32, %c0_i32_0 : i32, i32, i32
  }
  func.func @transform_4(%arg0: i32, %arg1: i32) -> (i32, i32, i32) {
    %c0_i32 = arith.constant 0 : i32
    %c0_i32_0 = arith.constant 0 : i32
    %c0_i32_1 = arith.constant 0 : i32
    return %arg1, %c0_i32, %c0_i32_0 : i32, i32, i32
  }
  func.func @transform_5(%arg0: i32, %arg1: i32) -> (i32, i32, i32) {
    %c0_i32 = arith.constant 0 : i32
    %c0_i32_0 = arith.constant 0 : i32
    %c0_i32_1 = arith.constant 0 : i32
    return %arg1, %c0_i32, %c0_i32_0 : i32, i32, i32
  }
  func.func @transform_6(%arg0: i32, %arg1: i32) -> (i32, i32, i32) {
    %c0_i32 = arith.constant 0 : i32
    %c0_i32_0 = arith.constant 0 : i32
    %c0_i32_1 = arith.constant 0 : i32
    return %arg1, %c0_i32, %c0_i32_0 : i32, i32, i32
  }
  func.func @transform_7(%arg0: i32, %arg1: i32) -> (i32, i32, i32) {
    %c0_i32 = arith.constant 0 : i32
    %c0_i32_0 = arith.constant 0 : i32
    %c0_i32_1 = arith.constant 0 : i32
    return %arg1, %c0_i32, %c0_i32_0 : i32, i32, i32
  }
  func.func @transform_8(%arg0: i32, %arg1: i32) -> (i32, i32, i32) {
    %c0_i32 = arith.constant 0 : i32
    %c0_i32_0 = arith.constant 0 : i32
    %c0_i32_1 = arith.constant 0 : i32
    return %arg1, %c0_i32, %c0_i32_0 : i32, i32, i32
  }
  func.func @transform_9(%arg0: i32, %arg1: i32) -> (i32, i32, i32) {
    %c0_i32 = arith.constant 0 : i32
    %c0_i32_0 = arith.constant 0 : i32
    %c0_i32_1 = arith.constant 0 : i32
    return %arg1, %c0_i32, %c0_i32_0 : i32, i32, i32
  }
  func.func @transform_10(%arg0: i32, %arg1: i32) -> (i32, i32, i32) {
    %c0_i32 = arith.constant 0 : i32
    %c0_i32_0 = arith.constant 0 : i32
    %c0_i32_1 = arith.constant 0 : i32
    return %arg1, %c0_i32, %c0_i32_0 : i32, i32, i32
  }
  func.func @transform_11(%arg0: i32, %arg1: i32) -> (i32, i32, i32) {
    %c0_i32 = arith.constant 0 : i32
    %c0_i32_0 = arith.constant 0 : i32
    %c0_i32_1 = arith.constant 0 : i32
    return %arg1, %c0_i32, %c0_i32_0 : i32, i32, i32
  }
  func.func @transform_12(%arg0: i32, %arg1: i32) -> (i32, i32, i32) {
    %c0_i32 = arith.constant 0 : i32
    %c0_i32_0 = arith.constant 0 : i32
    %c0_i32_1 = arith.constant 0 : i32
    return %arg1, %c0_i32, %c0_i32_0 : i32, i32, i32
  }
  func.func @transform_13(%arg0: i32, %arg1: i32) -> (i32, i32, i32) {
    %c0_i32 = arith.constant 0 : i32
    %c0_i32_0 = arith.constant 0 : i32
    %c0_i32_1 = arith.constant 0 : i32
    return %arg1, %c0_i32, %c0_i32_0 : i32, i32, i32
  }
  func.func @transform_14(%arg0: i32, %arg1: i32) -> (i32, i32, i32) {
    %c0_i32 = arith.constant 0 : i32
    %c0_i32_0 = arith.constant 0 : i32
    %c0_i32_1 = arith.constant 0 : i32
    return %arg1, %c0_i32, %c0_i32_0 : i32, i32, i32
  }
  func.func @transform_15(%arg0: i32, %arg1: i32) -> (i32, i32, i32) {
    %c0_i32 = arith.constant 0 : i32
    %c0_i32_0 = arith.constant 0 : i32
    %c0_i32_1 = arith.constant 0 : i32
    return %arg1, %c0_i32, %c0_i32_0 : i32, i32, i32
  }
  func.func @transform_16(%arg0: i32, %arg1: i32) -> (i32, i32, i32) {
    %c0_i32 = arith.constant 0 : i32
    %c0_i32_0 = arith.constant 0 : i32
    %c0_i32_1 = arith.constant 0 : i32
    return %arg1, %c0_i32, %c0_i32_0 : i32, i32, i32
  }
  func.func @transform_17(%arg0: i32, %arg1: i32) -> (i32, i32, i32) {
    %c0_i32 = arith.constant 0 : i32
    %c0_i32_0 = arith.constant 0 : i32
    %c0_i32_1 = arith.constant 0 : i32
    return %arg1, %c0_i32, %c0_i32_0 : i32, i32, i32
  }
  func.func @transform_18(%arg0: i32, %arg1: i32) -> (i32, i32, i32) {
    %c0_i32 = arith.constant 0 : i32
    %c0_i32_0 = arith.constant 0 : i32
    return %arg1, %arg0, %c0_i32 : i32, i32, i32
  }
}

</mosaic_0001>

<bundles_post_ra>
// kernel: tpu_custom_call.1
= control target key start
LH: loop header
LB: loop body
LE: loop exit
PB: predicated region body
PF: predicated region fallthrough
CT: control target
= control target key end

     0   :  { %s3788_s0 = inlined_call_operand.vmem [shape: f32[32,32], index: 0, kind: input, shape index: {}]   ;;  %s3789_s1 = inlined_call_operand.hbm [shape: f32[16,16], index: 1, kind: input, shape index: {}]   ;;  %s3790_s2 = inlined_call_operand.vmem [shape: f32[32,32], index: 2, kind: input, shape index: {}]   ;;  %s3791_s3 = inlined_call_operand.vmem [shape: bf16[2,32,96], index: 3, kind: input, shape index: {}]   ;;  %s3792_s4 = inlined_call_operand.vmem [shape: f32[2,1,96], index: 4, kind: input, shape index: {}]   ;;  %s3793_s5 = inlined_call_operand.hbm [shape: bf16[2,32,32], index: 5, kind: input, shape index: {}]   ;;  %s3794_s6 = inlined_call_operand.vmem [shape: f32[2,1,32], index: 6, kind: input, shape index: {}]   ;;  %s3795_s7 = inlined_call_operand.vmem [shape: f32[2,1,32], index: 7, kind: input, shape index: {}]   ;;  %s3796_s8 = inlined_call_operand.vmem [shape: f32[2,1,32], index: 8, kind: input, shape index: {}]   ;;  %s3797_s9 = inlined_call_operand.vmem [shape: f32[2,1,32], index: 9, kind: input, shape index: {}]   ;;  %s3798_s10 = inlined_call_operand.vmem [shape: f32[2,1,32], index: 10, kind: input, shape index: {}]   ;;  %s3799_s11 = inlined_call_operand.vmem [shape: f32[2,1,32], index: 11, kind: input, shape index: {}]   ;;  %s3800_s12 = inlined_call_operand.hbm [shape: bf16[2,32,64], index: 12, kind: input, shape index: {}]   ;;  %s3801_s13 = inlined_call_operand.vmem [shape: f32[2,1,64], index: 13, kind: input, shape index: {}]   ;;  %s3802_s14 = inlined_call_operand.vmem [shape: bf16[2,64,32], index: 14, kind: input, shape index: {}]   ;;  %s3803_s15 = inlined_call_operand.vmem [shape: f32[2,1,32], index: 15, kind: input, shape index: {}]   ;;  %s3804_s16 = inlined_call_operand.vmem [shape: f32[2,1,32], index: 16, kind: input, shape index: {}]   ;;  %s3805_s17 = inlined_call_operand.vmem [shape: f32[2,1,32], index: 17, kind: input, shape index: {}]   ;;  %s3806_s18 = inlined_call_operand.hbm [shape: f32[2,32,32], index: 18, kind: output, shape index: {}]  }
   0x1   :  { %3832 = sst [smem:[#allocation24_spill]] %s3788_s0 }
   0x2   :  { %3833 = sst [smem:[#allocation25_spill]] %s3789_s1 }
   0x3   :  { %3834 = sst [smem:[#allocation26_spill]] %s3790_s2 }
   0x4   :  { %3835 = sst [smem:[#allocation27_spill]] %s3791_s3 }
   0x5   :  { %3836 = sst [smem:[#allocation28_spill]] %s3793_s5 }
   0x6   :  { %3837 = sst [smem:[#allocation29_spill]] %s3796_s8 }
   0x7   :  { %3838 = sst [smem:[#allocation30_spill]] %s3799_s11 }
   0x8   :  { %3839 = sst [smem:[#allocation31_spill]] %s3800_s12 }
   0x9   :  { %3840 = sst [smem:[#allocation32_spill]] %s3802_s14 }
   0xa   :  { %3841 = sst [smem:[#allocation33_spill]] %s3803_s15 }
   0xb   :  { %3842 = sst [smem:[#allocation34_spill]] %s3804_s16 }
   0xc   :  { %3843 = sst [smem:[#allocation35_spill]] %s3805_s17 }
   0xd   :  { %3844 = sst [smem:[#allocation36_spill]] %s3806_s18 }
   0xe   :  { %23 = vsyncpa [#allocation4], 0 }
   0xf   :  { %24 = vsyncpa [#allocation7], 0 }
  0x10   :  { %26 = vsyncpa [#allocation7 + $0x1], 0 }
  0x11   :  { %27 = vsyncpa [#allocation5], 0 }
  0x12   :  { %29 = vsyncpa [#allocation5 + $0x1], 0  ;;  %s3107_s27 = smov 0   ;;  %s3109_s28 = smov 0  }
  0x13   :  { %s3111_s29 = smov 0   ;;  %s3113_s30 = smov 0  }
  0x14   :  { %s3115_s0 = smov 0   ;;  %s3117_s19 = smov 0  }
  0x15 LB: > { %3845 = sst [smem:[#allocation13_spill]] %s2972_s27  ;;  %s44_s1 = sadd.s32 1, %s2988_s0  ;;  %s2992_s19 = sphi %s3117_s19, %s35_s19   ;;  %s2988_s0 = sphi %s3115_s0, %s3909_s0   ;;  %s2984_s30 = sphi %s3113_s30, %s3908_s30   ;;  %s2980_s29 = sphi %s3111_s29, %s3907_s29   ;;  %s2976_s28 = sphi %s3109_s28, %s3906_s28   ;;  %s2972_s27 = sphi %s3107_s27, %s3905_s27  }
  0x16   : > { %3846 = sst [smem:[#allocation14_spill]] %s2976_s28  ;;  %s174_s20 = sadd.s32 1, %s2980_s29 }
  0x17   : > { %3847 = sst [smem:[#allocation15_spill]] %s2980_s29  ;;  %p45_p0 = scmp.ge.s32.totalorder %s44_s1, 2 }
  0x18   : > { %3848 = sst [smem:[#allocation16_spill]] %s2988_s0  ;;  %p181_p1 = scmp.ne.s32.totalorder %s2980_s29, %s2976_s28 }
  0x19   : > { %3849 = sst [smem:[#allocation17_spill]] %s2992_s19  ;;  %p182_p2 = scmp.eq.s32.totalorder %s2992_s19, 0 }
  0x1a   : > { %s3911_s1 = smov (%p45_p0, %s44_s1), 0  ;;  %p2668_p5 = scmp.lt.s32.totalorder %s2992_s19, 2 }
  0x1b   : > { %3850 = sst [smem:[#allocation18_spill]] %s3911_s1  ;;  %p183_p4 = por %p182_p2, %p181_p1 }
  0x1c   : > { %s171_s21 = ssub.s32 %s2988_s0, %s3911_s1  ;;  %s590_s22 = sand.u32 1, %s2992_s19  }
  0x1d   : > { %p172_p6 = scmp.eq.s32.totalorder %s171_s21, 0  ;;  %s592_s2 = sand.u32 1, %s2980_s29  }
  0x1e   : > { %s3812_s23 = sshll.u32 %s2988_s0, 8  ;;  %s3157_s25 = sshll.u32 %s592_s2, 4 }
  0x1f   : > { %s3155_s24 = scalar_select %p172_p6, %s2980_s29, %s174_s20  }
  0x20   : > { %s3852_s5 = sld [smem:[#allocation28_spill]]  ;;  %p3166_p7 = pnand %p2668_p5, %p183_p4 }
  0x21   : > { %3851 = sst [smem:[#allocation19_spill]] %s3155_s24  ;;  %s594_s20 = scalar_lea.vmem [#allocation6], %s3157_s25 }
  0x22   : > { %s601_s21 = sshll.u32 %s594_s20, 4  ;;  %s3173_s2 = scalar_lea.sflag [#allocation7], %s590_s22  ;;  %s3171_s21 = int_to_ptr.vmem [resolvable:$true] %s601_s21 }
  0x23   : > { %p2820_p9 = pneg %p3166_p7 }
  0x26   : > { %s3164_s17 = scalar_lea.hbm %s3852_s5, %s3812_s23  ;;  %s2823_s24 = scalar_lea.hbm %s3852_s5, 512 }
  0x27   : > { %s2818_s18 = scalar_lea.hbm %s3164_s17, 256  ;;  %p2824_p12 = scmp.lt.u32.totalorder %s3164_s17, %s3852_s5 }
  0x28   : > { %p2819_p8 = scmp.ne.s32.totalorder %s3164_s17, %s2818_s18  ;;  %p2825_p13 = scmp.lt.u32.totalorder %s2823_s24, %s2818_s18 }
  0x29   : > { %p2827_p2 = scmp.lt.u32.totalorder %s2818_s18, %s3164_s17 }
  0x2a   : > { %p2821_p10 = pnand %p2820_p9, %p2819_p8  ;;  %p2826_p0 = por %p2825_p13, %p2824_p12 }
  0x2c   : > { %p2822_p11 = pneg %p2821_p10  ;;  %p2828_p4 = por %p2827_p2, %p2826_p0 }
  0x2e   : > { %p2829_p5 = pnand %p2828_p4, %p2822_p11 }
  0x30   : > { %2832 = shalt.err (!%p2829_p5)
}
  0x31   : > { %s2833_s22 = scalar_lea.vmem %s3171_s21, 256  ;;  %s2994_s23 = smov [#allocation6]  }
  0x32   : > { %p2834_p6 = scmp.ne.s32.totalorder %s3171_s21, %s2833_s22  ;;  %s2838_s20 = sshll.u32 %s2994_s23, 4  ;;  %s2839_s20 = int_to_ptr.vmem [resolvable:$false] %s2838_s20 }
  0x33   : > { %s2840_s14 = scalar_lea.vmem %s2839_s20, 512  ;;  %p2841_p3 = scmp.lt.s32.totalorder %s3171_s21, %s2839_s20 }
  0x34   : > { %p2836_p8 = pnand %p2834_p6, %p2820_p9  ;;  %p2842_p12 = scmp.lt.s32.totalorder %s2840_s14, %s2833_s22 }
  0x36   : > { %p2837_p10 = pneg %p2836_p8  ;;  %p2843_p13 = por %p2842_p12, %p2841_p3 }
  0x38   : > { %p2844_p0 = pnand %p2843_p13, %p2837_p10 }
  0x3a   : > { %2847 = shalt.err (!%p2844_p0)
}
  0x3b   : > { %s3813_s16 = smov 64   ;;  %s3814_s24 = smov 4  }
  0x3c   : > { %2659 = dma.hbm_to_vmem [thread:$0]  (!%p3166_p7), %s3164_s17, 256, %s3171_s21, %s3173_s2, %s3813_s16, %s3813_s16, %s3814_s24  }
  0x3d   : > { %s3854_s18 = sshll.u32 %s2988_s0, 8  ;;  %s3855_s12 = sld [smem:[#allocation31_spill]] }
  0x3e   : > { %s651_s20 = scalar_lea.vmem [#allocation8], %s3157_s25  ;;  %s3215_s5 = sadd.s32 4294967295, %s2992_s19  }
  0x3f   : > { %s658_s14 = sshll.u32 %s651_s20, 4  ;;  %s2422_s15 = sadd.s32 4294967294, %s2992_s19   ;;  %s3212_s14 = int_to_ptr.vmem [resolvable:$true] %s658_s14 }
  0x40   : > { %p187_p3 = scmp.ne.s32.totalorder %s2976_s28, %s2972_s27  ;;  %p3817_p11 = scmp.eq.s32.totalorder %s3215_s5, 0 }
  0x41   : > { %p525_p2 = scmp.eq.s32.totalorder %s3215_s5, 1  ;;  %p531_p4 = scmp.eq.s32.totalorder %s2422_s15, 1 }
  0x42   : > { %p2423_p5 = scmp.ge.s32.totalorder %s2992_s19, 1  ;;  %p3225_p6 = por %p3817_p11, %p187_p3 }
  0x43   : > { %s3209_s23 = scalar_lea.hbm %s3855_s12, %s3854_s18  ;;  %p3232_p8 = por %p525_p2, %p181_p1 }
  0x44   : > { %s3856_s17 = scalar_select %p3225_p6, 1, 0 }
  0x45   : > { %s3857_s25 = scalar_select %p3232_p8, 1, 0 }
  0x46   : > { %p3236_p10 = por %p531_p4, %p187_p3  ;;  %p538_p12 = scmp.lt.s32.totalorder %s2992_s19, 3 }
  0x47   : > { %3858 = sst [smem:[#allocation20_spill]] %s3857_s25  ;;  %s2997_s18 = smov [#allocation3]  }
  0x48   : > { %s3859_s21 = scalar_select %p3236_p10, 1, 0 }
  0x49   : > { %p3241_p13 = pnand %p2423_p5, %p538_p12  ;;  %s559_s26 = sshll.u32 %s2997_s18, 4  ;;  %s3245_s26 = int_to_ptr.vmem [resolvable:$true] %s559_s26 }
  0x4a   : > { %3860 = sst [smem:[#allocation21_spill]] %s3859_s21  ;;  %s2848_s22 = scalar_lea.hbm %s3209_s23, 256 }
  0x4b   : > { %s3861_s15 = scalar_select %p3241_p13, 1, 0 }
  0x4c   : > { %p2849_p0 = scmp.ne.s32.totalorder %s3209_s23, %s2848_s22  ;;  %s2853_s24 = scalar_lea.hbm %s3855_s12, 512 }
  0x4d   : > { %p2854_p4 = scmp.lt.u32.totalorder %s3209_s23, %s3855_s12  ;;  %p2855_p5 = scmp.lt.u32.totalorder %s2853_s24, %s2848_s22 }
  0x4e   : > { %p2851_p3 = pnand %p2849_p0, %p2820_p9  ;;  %p2857_p11 = scmp.lt.u32.totalorder %s2848_s22, %s3209_s23 }
  0x4f   : > { %p2856_p12 = por %p2855_p5, %p2854_p4 }
  0x50   : > { %p2852_p2 = pneg %p2851_p3 }
  0x51   : > { %p2858_p10 = por %p2857_p11, %p2856_p12 }
  0x53   : > { %p2859_p8 = pnand %p2858_p10, %p2852_p2 }
  0x55   : > { %2862 = shalt.err (!%p2859_p8)
}
  0x56   : > { %s2863_s18 = scalar_lea.vmem %s3212_s14, 256  ;;  %s2998_s16 = smov [#allocation8]  }
  0x57   : > { %p2864_p0 = scmp.ne.s32.totalorder %s3212_s14, %s2863_s18  ;;  %s2868_s20 = sshll.u32 %s2998_s16, 4  ;;  %s2869_s20 = int_to_ptr.vmem [resolvable:$false] %s2868_s20 }
  0x58   : > { %s2870_s29 = scalar_lea.vmem %s2869_s20, 512  ;;  %p2871_p6 = scmp.lt.s32.totalorder %s3212_s14, %s2869_s20 }
  0x59   : > { %p2866_p3 = pnand %p2864_p0, %p2820_p9  ;;  %p2872_p4 = scmp.lt.s32.totalorder %s2870_s29, %s2863_s18 }
  0x5b   : > { %p2867_p1 = pneg %p2866_p3  ;;  %p2873_p5 = por %p2872_p4, %p2871_p6 }
  0x5d   : > { %p2874_p11 = pnand %p2873_p5, %p2867_p1 }
  0x5f   : > { %2877 = shalt.err (!%p2874_p11)
}
  0x60   : > { %s3862_s0 = smov 4   ;;  %s3863_s24 = smov 64  }
  0x61   : > { %2662 = dma.hbm_to_vmem [thread:$0]  (!%p3166_p7), %s3209_s23, 256, %s3212_s14, %s3173_s2, %s3863_s24, %s3863_s24, %s3862_s0  }
  0x62   : > { %p3864_p9 = scmp.eq.s32.totalorder %s3215_s5, 0  ;;  %p3865_p8 = pneg %p3241_p13 }
  0x63   : > { %s3867_s20 = sld [smem:[#allocation25_spill]] }
  0x64   : > { %p3281_p10 = pnand %p3865_p8, %p3864_p9 }
  0x66   : > { %p2880_p1 = pneg %p3281_p10 }
  0x69   : > { %s2878_s1 = scalar_lea.hbm %s3867_s20, 256 }
  0x6a   : > { %p2879_p6 = scmp.ne.s32.totalorder %s3867_s20, %s2878_s1  ;;  %p2885_p12 = scmp.lt.u32.totalorder %s2878_s1, %s3867_s20 }
  0x6c   : > { %p2881_p2 = pnand %p2880_p1, %p2879_p6 }
  0x6e   : > { %p2882_p7 = pneg %p2881_p2 }
  0x70   : > { %p2887_p0 = pnand %p2885_p12, %p2882_p7 }
  0x72   : > { %2890 = shalt.err (!%p2887_p0)
}
  0x73   : > { %s2891_s14 = scalar_lea.vmem %s3245_s26, 256  ;;  %p2899_p11 = scmp.lt.s32.totalorder %s3245_s26, %s3245_s26 }
  0x74   : > { %p2892_p3 = scmp.ne.s32.totalorder %s3245_s26, %s2891_s14  ;;  %p2900_p9 = scmp.lt.s32.totalorder %s2891_s14, %s2891_s14 }
  0x76   : > { %p2894_p4 = pnand %p2892_p3, %p2880_p1  ;;  %p2901_p8 = por %p2900_p9, %p2899_p11 }
  0x78   : > { %p2895_p5 = pneg %p2894_p4 }
  0x7a   : > { %p2902_p13 = pnand %p2901_p8, %p2895_p5 }
  0x7c   : > { %2905 = shalt.err (!%p2902_p13)
}
  0x7d   : > { %s2999_s12 = smov 128   ;;  %s3000_s0 = smov 8  }
  0x7e   : > { %2655 = dma.hbm_to_vmem [thread:$0]  (!%p3281_p10), %s3867_s20, 256, %s3245_s26, [#allocation4], %s2999_s12, %s2999_s12, %s3000_s0  }
  0x7f   : > { %p3868_p6 = scmp.ne.s32.totalorder %s3861_s15, 0 }
  0x81   : > { %702 = sbr.rel (%p3868_p6) target bundleno = 2964 (0xb94), region = 92 }
  0x88   : > { %p3869_p1 = scmp.eq.s32.totalorder %s3215_s5, 0 }
  0x8a   : > { %2959 = dma.done.wait (%p3869_p1), [#allocation4], 256   ;;  %p3870_p2 = pmov %p3869_p1 }
  0x8b   : > { %s708_s16 = sand.u32 1, %s3215_s5   ;;  %s3314_s1 = sand.u32 1, %s2976_s28  }
  0x8c   : > { %2961 = vsyncadd (%p3870_p2), [#allocation4], 4294967040  ;;  %3871 = sst [smem:[#allocation22_spill]] %s3314_s1  ;;  %s2435_s22 = sshll.u32 %s3314_s1, 4 }
  0x8d   : > { %s709_s29 = scalar_lea.sflag [#allocation7], %s708_s16  ;;  %s3317_s2 = scalar_lea.vmem [#allocation6], %s2435_s22 }
  0x8e   : > { %3872 = sst [smem:[#allocation23_spill]] %s3317_s2  ;;  %p3873_p13 = scmp.ne.s32.totalorder %s3856_s17, 0 }
  0x90   : > { %2963 = dma.done.wait (%p3873_p13), %s709_s29, 512  }
  0x91   : > { %2965 = vsyncadd (%p3873_p13), %s709_s29, 4294966784  ;;  %s2437_s15 = sshll.u32 %s3314_s1, 5  ;;  %p833_p10 = scmp.lt.s32.totalorder %s2984_s30, 1 }
  0x92   : > { %s3874_s3 = sld [smem:[#allocation27_spill]]  ;;  %s3877_s21 = sld [smem:[#allocation33_spill]] }
  0x93   : > { %s3326_s26 = scalar_select %p833_p10, %s2984_s30, 1 }
  0x94   : > { %s3878_s2 = sld [smem:[#allocation32_spill]]  ;;  %s3880_s18 = sld [smem:[#allocation35_spill]] }
  0x95   : > { %s2491_s5 = sshll.u32 %s3326_s26, 4  ;;  %s861_s28 = scalar_lea.vmem %s3801_s13, %s3326_s26 }
  0x96   : > { %s2492_s20 = sshll.u32 %s3326_s26, 5  ;;  %s3382_s29 = scalar_lea.vmem [#allocation8], %s2435_s22 }
  0x97   : > { %s3384_s16 = scalar_lea.vmem [#allocation9], %s2437_s15  ;;  %p2442_p7 = scmp.ne.s32.totalorder %s2984_s30, 0 }
  0x98   : > { %s837_s24 = scalar_lea.vmem %s3874_s3, %s2491_s5  ;;  %s869_s25 = scalar_lea.vmem %s3877_s21, %s3326_s26  ;;  %vm886_vm0 = vcmask (!%p2442_p7), 261120  }
  0x99   : > { %s3879_s5 = sld [smem:[#allocation34_spill]]  ;;  %881 = sbr.rel (%p2442_p7) target bundleno = 164 (0xa4), region = 108 }
  0x9a   : > { %s3372_s17 = scalar_lea.vmem %s3878_s2, %s2492_s20  ;;  %s875_s11 = scalar_lea.vmem %s3880_s18, %s3326_s26 }
  0x9b   : > { %s3881_s3 = sld [smem:[#allocation24_spill]] (!%p2442_p7) }
  0x9f   : > { %s872_s8 = scalar_lea.vmem %s3879_s5, %s3326_s26 }
  0xa1   : > { %v882_v0 = vld [vmem:[%s3881_s3] sm:$0xff]  ;;  %v883_v1 = vld [vmem:[%s3881_s3 + $0x8] sm:$0xff]  ;;  %v884_v2 = vld [vmem:[%s3881_s3 + $0x10] sm:$0xff] }
  0xa2   : > { %887 = vst.msk [vmem:[#allocation2] sm:$0xff] %vm886_vm0, %v882_v0  ;;  %888 = vst.msk [vmem:[#allocation2 + $0x8] sm:$0xff] %vm886_vm0, %v883_v1  ;;  %v885_v3 = vld [vmem:[%s3881_s3 + $0x18] sm:$0xff] }
  0xa3   : > { %889 = vst.msk [vmem:[#allocation2 + $0x10] sm:$0xff] %vm886_vm0, %v884_v2  ;;  %890 = vst.msk [vmem:[#allocation2 + $0x18] sm:$0xff] %vm886_vm0, %v885_v3 }
  0xa4 PF: > { %v2744_v4 = vld [vmem:[%s837_s24] sm:$0xff]   ;;  %v2745_v5 = vld [vmem:[%s837_s24 + $0x8] sm:$0xff]   ;;  %vm920_vm1 = vcmask 261120   ;;  %v3001_v12 = vmov 0.0   ;;  %s3882_s2 = scalar_lea.vmem %s3792_s4, %s3326_s26  ;;  %vm3002_vm2 = vmmov 0   ;;  %s3003_s14 = smov 64  }
  0xa5   : > { %2536 = vmatprep.subr.bf16.mxu1 %v2744_v4  ;;  %2550 = vmatprep.subr.bf16.mxu0 %v3001_v12  ;;  %v2443_v14 = vld [vmem:[%s3882_s2] ss:$0 sm:$0xff]  ;;  %s3004_s23 = smov 96   ;;  %s3005_s12 = smov 80   ;;  %vm983_vm3 = vcmask 130048   ;;  %v3459_v40 = vld [vmem:[#allocation3 + $0x8] sm:$0xff] }
  0xa6   : > { %2537 = vmatpush3.bf16.msra.mxu1 %v2744_v4  ;;  %2552 = vmatprep.mubr.msk.bf16.mxu0 %vm3002_vm2, %v3001_v12  ;;  %v3454_v30 = vld [vmem:[#allocation3] sm:$0xff]  ;;  %s3006_s0 = smov 112   ;;  %s3007_s19 = smov 48   ;;  %vm2009_vm4 = vcmask 523264  }
  0xa7   : > { %2538 = vmatprep.subr.bf16.mxu1 %v2745_v5  ;;  %s3883_s27 = sld [smem:[#allocation23_spill]]  ;;  %s3884_s5 = sld [smem:[#allocation26_spill]] }
  0xa8   : > { %s3886_s20 = scalar_lea.vmem %s3794_s6, %s3326_s26  ;;  %s3887_s1 = scalar_lea.vmem %s3798_s10, %s3326_s26 }
  0xa9   : > { %v3399_v6 = vld [vmem:[#allocation2] sm:$0xff]  ;;  %v3401_v7 = vld [vmem:[#allocation2 + $0x8] sm:$0xff]  ;;  %s3888_s24 = scalar_lea.vmem %s3795_s7, %s3326_s26  ;;  %s2167_s2 = sshll.u32 %s3384_s16, 4  ;;  %s3733_s2 = int_to_ptr.vmem [resolvable:$true] %s2167_s2 }
  0xaa   : > { %v3403_v8 = vld [vmem:[#allocation2 + $0x10] sm:$0xff]  ;;  %v3407_v9 = vpack.c.bf16 %v3401_v7, %v3399_v6  ;;  %v3409_v10 = vld [vmem:[#allocation2 + $0x18] sm:$0xff]  ;;  %2539 = vmatpush3.bf16.msra.mxu1 %v2745_v5 }
  0xab   : > { %v3415_v11 = vpack.c.bf16 %v3409_v10, %v3403_v8  ;;  %2544 = vmatprep.subr.bf16.mxu1 %v3001_v12 }
  0xac   : > { %2540 = vmatprep.mubr.msk.bf16.mxu1 %vm920_vm1, %v3407_v9 }
  0xad   : > { %2541 = vmatmul.mubr.msk.bf16.vlgmr.msra.gmra.mrb[0].mxu1 %vm920_vm1, %v3415_v11 }
  0xae   : > { %2546 = vmatprep.mubr.msk.bf16.mxu1 %vm3002_vm2, %v3001_v12 }
 0x180   : > { %v2542_v13 = vpop.f32.mrb[0].mxu1 }
 0x181   : > { %v961_v15 = vpop.f32.mrb[1].mxu1  ;;  %v970_v17 = vadd.f32 %v2542_v13, %v2443_v14 }
 0x182   : > { %v2543_v16 = vpop.f32.mrb[2].mxu1  ;;  %v962_v20 = vadd.f32 %v2443_v14, %v961_v15 }
 0x183   : > { %v973_v18 = vadd.f32 %v2543_v16, %v2443_v14  ;;  %v964_v19 = vpop.f32.mrb[3].mxu1 }
 0x184   : > { %v965_v21 = vadd.f32 %v2443_v14, %v964_v19 }
 0x185   : > { %v3430_v22 = vpack.c.bf16 %v973_v18, %v970_v17 }
 0x186   : > { %v3432_v23 = vpack.c.bf16 %v965_v21, %v962_v20 }
 0x188   : > { %1119 = vrot.lane.b32.xlu1 %v3432_v23, %s3003_s14  ;;  %981 = vrot.lane.b32.xlu0 %v3432_v23, %s3004_s23 }
 0x18c   : > { %1166 = vrot.lane.b32.xlu1 %v3430_v22, %s3003_s14  ;;  %1032 = vrot.lane.b32.xlu0 %v3430_v22, %s3004_s23  ;;  %s3008_s14 = smov 16  }
 0x190   : > { %1223 = vrot.lane.b32.xlu1 %v3432_v23, %s3005_s12 }
 0x1fa   : > { %v982_v24 = vpop.permute.xlu0 %981  ;;  %v1120_v28 = vpop.permute.xlu1 %1119 }
 0x1fb   : > { %v988_v25 = vsel %vm983_vm3, %v982_v24, 0 }
 0x1fc   : > { %2545 = vmatpush3.bf16.xpose.msra.mxu1 %v988_v25 }
 0x1fd   : > { %2556 = vmatprep.subr.bf16.mxu1 %v3001_v12 }
 0x1fe   : > { %v1033_v26 = vpop.permute.xlu0 %1032  ;;  %v1167_v29 = vpop.permute.xlu1 %1166 }
 0x1ff   : > { %v1038_v27 = vsel %vm983_vm3, %v1033_v26, 0 }
 0x200   : > { %2551 = vmatpush3.bf16.xpose.msra.mxu0 %v1038_v27 }
 0x201   : > { %2562 = vmatprep.subr.bf16.mxu0 %v3001_v12 }
 0x202   : > { %v1224_v48 = vpop.permute.xlu1 %1223 }
 0x203   : > { %2547 = vmatmul.mubr.msk.bf16.vlgmr.msra.gmra.mrb[4].mxu1 %vm983_vm3, %v3432_v23  ;;  %v1229_v5 = vsel %vm983_vm3, %v1224_v48, 0 }
 0x204   : > { %2557 = vmatpush3.bf16.msra.mxu1 %v1120_v28  ;;  %2558 = vmatprep.mubr.msk.bf16.mxu1 %vm3002_vm2, %v3001_v12 }
 0x205   : > { %2568 = vmatprep.subr.bf16.mxu1 %v3001_v12 }
 0x207   : > { %2553 = vmatmul.mubr.msk.bf16.vlgmr.msra.gmra.mrb[0].mxu0 %vm983_vm3, %v3430_v22 }
 0x208   : > { %2563 = vmatpush3.bf16.msra.mxu0 %v1167_v29  ;;  %2564 = vmatprep.mubr.msk.bf16.mxu0 %vm3002_vm2, %v3001_v12 }
 0x209   : > { %2574 = vmatprep.subr.bf16.mxu0 %v3001_v12 }
 0x2d6   : > { %v1024_v31 = vpop.f32.mrb[4].mxu1 }
 0x2d7   : > { %v1025_v32 = vadd.f32 %v1024_v31, %v3454_v30  ;;  %v2548_v33 = vpop.f32.mrb[5].mxu1 }
 0x2d8   : > { %v1027_v34 = vpop.f32.mrb[6].mxu1 }
 0x2d9   : > { %v2549_v35 = vpop.f32.mrb[7].mxu1  ;;  %v1081_v36 = vsel %vm983_vm3, %v1025_v32, -inf  ;;  %v1028_v45 = vadd.f32 %v1027_v34, %v3459_v40 }
 0x2da   : > { %1082 = vmax.xlane.f32.xlu1 %v1081_v36  ;;  %v1074_v37 = vpop.f32.mrb[0].mxu0 }
 0x2db   : > { %v1075_v38 = vadd.f32 %v1074_v37, %v3454_v30  ;;  %v2554_v39 = vpop.f32.mrb[1].mxu0  ;;  %v1084_v47 = vsel %vm983_vm3, %v1028_v45, -inf }
 0x2dc   : > { %v1077_v41 = vpop.f32.mrb[2].mxu0 }
 0x2dd   : > { %v1078_v42 = vadd.f32 %v1077_v41, %v3459_v40  ;;  %v2555_v43 = vpop.f32.mrb[3].mxu0  ;;  %v1087_v44 = vsel %vm983_vm3, %v1075_v38, -inf }
 0x2de   : > { %1088 = vmax.xlane.f32.xlu0 %v1087_v44 }
 0x2df   : > { %v1090_v46 = vsel %vm983_vm3, %v1078_v42, -inf }
 0x2e0   : > { %1091 = vmax.xlane.f32.xlu1 %v1090_v46 }
 0x2e4   : > { %1085 = vmax.xlane.f32.xlu1 %v1084_v47 }
 0x2f4   : > { %1221 = vrot.lane.b32.xlu0 %v3432_v23, %s3006_s0 }
 0x2f5   : > { %1274 = vrot.lane.b32.xlu1 %v3430_v22, %s3005_s12  ;;  %s3898_s12 = sld [smem:[#allocation36_spill]] }
 0x2f9   : > { %1272 = vrot.lane.b32.xlu1 %v3430_v22, %s3006_s0  ;;  %s3885_s0 = scalar_lea.vmem %s3797_s9, %s3326_s26 }
 0x367   : > { %v1083_v49 = vpop.xlane.xlu1 %1082 }
 0x368   : > { %v1093_v52 = vsub.f32 %v1025_v32, %v1083_v49 }
 0x36a   : > { %v1097_v57 = vmul.f32 1.442695, %v1093_v52 }
 0x36b   : > { %v1089_v50 = vpop.xlane.xlu0 %1088 }
 0x36c   : > { %v1095_v51 = vsub.f32 %v1075_v38, %v1089_v50 }
 0x36d   : > { %v1092_v53 = vpop.xlane.xlu1 %1091 }
 0x36e   : > { %v1101_v54 = vmul.f32 1.442695, %v1095_v51  ;;  %v1096_v55 = vsub.f32 %v1078_v42, %v1092_v53 }
 0x36f   : > { %v1222_v14 = vpop.permute.xlu0 %1221 }
 0x370   : > { %v1103_v56 = vmul.f32 1.442695, %v1096_v55  ;;  %2754 = vpow2.f32 %v1101_v54 }
 0x371   : > { %v1086_v58 = vpop.xlane.xlu1 %1085 }
 0x372   : > { %2756 = vpow2.f32 %v1103_v56  ;;  %v1094_v59 = vsub.f32 %v1028_v45, %v1086_v58 }
 0x373   : > { %2758 = vpow2.f32 %v1097_v57 }
 0x374   : > { %v1099_v60 = vmul.f32 1.442695, %v1094_v59 }
 0x375   : > { %v1275_v63 = vpop.permute.xlu1 %1274 }
 0x376   : > { %2760 = vpow2.f32 %v1099_v60  ;;  %v1280_v2 = vsel %vm983_vm3, %v1275_v63, 0 }
 0x379   : > { %v1273_v13 = vpop.permute.xlu1 %1272 }
 0x37a   : > { %v3470_v61 = vpop.eup %2754 }
 0x37c   : > { %v3472_v62 = vpop.eup %2756 }
 0x37d   : > { %v1118_v0 = vpack.c.bf16 %v3472_v62, %v3470_v61  ;;  %v3476_v1 = vpop.eup %2758 }
 0x37f   : > { %2565 = vmatmul.mubr.msk.bf16.vlgmr.msra.gmra.mrb[4].mxu0 %vm983_vm3, %v1118_v0  ;;  %v1105_v0 = vsel %vm983_vm3, %v3476_v1, 0.0 }
 0x380   : > { %v3480_v3 = vpop.eup %2760  ;;  %2575 = vmatpush3.bf16.xpose.msra.mxu0 %v1280_v2  ;;  %2576 = vmatprep.mubr.msk.bf16.mxu0 %vm3002_vm2, %v3001_v12 }
 0x381   : > { %v1117_v4 = vpack.c.bf16 %v3480_v3, %v3476_v1  ;;  %2586 = vmatprep.subr.bf16.mxu0 %v3001_v12  ;;  %v1108_v2 = vsel %vm983_vm3, %v3480_v3, 0.0  ;;  %v1643_v1 = vld [vmem:[%s3884_s5 + $0x8] sm:$0xff] }
 0x383   : > { %2559 = vmatmul.mubr.msk.bf16.vlgmr.msra.gmra.mrb[8].mxu1 %vm983_vm3, %v1117_v4  ;;  %v1111_v4 = vsel %vm983_vm3, %v3470_v61, 0.0 }
 0x384   : > { %2569 = vmatpush3.bf16.xpose.msra.mxu1 %v1229_v5  ;;  %2570 = vmatprep.mubr.msk.bf16.mxu1 %vm3002_vm2, %v3001_v12  ;;  %v1114_v5 = vsel %vm983_vm3, %v3472_v62, 0.0 }
 0x385   : > { %2580 = vmatprep.subr.bf16.mxu1 %v3001_v12 }
 0x387   : > { %2577 = vmatmul.mubr.msk.bf16.vlgmr.msra.gmra.mrb[8].mxu0 %vm983_vm3, %v1273_v13 }
 0x388   : > { %2588 = vmatprep.mubr.msk.bf16.mxu0 %vm3002_vm2, %v3001_v12 }
 0x38b   : > { %2571 = vmatmul.mubr.msk.bf16.vlgmr.msra.gmra.mrb[12].mxu1 %vm983_vm3, %v1222_v14  ;;  %v2747_v14 = vld [vmem:[%s3883_s27 + $0x8] sm:$0xff]  }
 0x38c   : > { %2582 = vmatprep.mubr.msk.bf16.mxu1 %vm3002_vm2, %v3001_v12 }
 0x452   : > { %v3498_v15 = vpop.f32.mrb[4].mxu0 }
 0x453   : > { %v2566_v16 = vpop.f32.mrb[5].mxu0 }
 0x454   : > { %v3500_v17 = vpop.f32.mrb[6].mxu0  ;;  %v1644_v16 = vld [vmem:[%s3884_s5 + $0x10] sm:$0xff] }
 0x455   : > { %v2567_v18 = vpop.f32.mrb[7].mxu0 }
 0x456   : > { %v3502_v19 = vpop.f32.mrb[8].mxu1 }
 0x457   : > { %v2560_v20 = vpop.f32.mrb[9].mxu1 }
 0x458   : > { %v3504_v21 = vpop.f32.mrb[10].mxu1 }
 0x459   : > { %v2561_v24 = vpop.f32.mrb[11].mxu1 }
 0x45a   : > { %v1316_v25 = vpop.f32.mrb[8].mxu0 }
 0x45b   : > { %v1317_v26 = vadd.f32 %v1316_v25, %v3454_v30  ;;  %v2578_v27 = vpop.f32.mrb[9].mxu0  ;;  %v1645_v25 = vld [vmem:[%s3884_s5 + $0x18] sm:$0xff] }
 0x45c   : > { %v1319_v28 = vpop.f32.mrb[10].mxu0 }
 0x45d   : > { %v2579_v29 = vpop.f32.mrb[11].mxu0  ;;  %v1329_v12 = vsel %vm983_vm3, %v1317_v26, -inf  ;;  %v1320_v35 = vadd.f32 %v1319_v28, %v3459_v40 }
 0x45e   : > { %v1265_v31 = vpop.f32.mrb[12].mxu1  ;;  %1330 = vmax.xlane.f32.xlu1 %v1329_v12 }
 0x45f   : > { %v1266_v32 = vadd.f32 %v1265_v31, %v3454_v30  ;;  %v2572_v33 = vpop.f32.mrb[13].mxu1  ;;  %v1332_v41 = vsel %vm983_vm3, %v1320_v35, -inf }
 0x460   : > { %v1268_v34 = vpop.f32.mrb[14].mxu1 }
 0x461   : > { %v1269_v36 = vadd.f32 %v1268_v34, %v3459_v40  ;;  %v2573_v37 = vpop.f32.mrb[15].mxu1  ;;  %v1323_v38 = vsel %vm983_vm3, %v1266_v32, -inf }
 0x462   : > { %1324 = vmax.xlane.f32.xlu1 %v1323_v38 }
 0x463   : > { %v1326_v39 = vsel %vm983_vm3, %v1269_v36, -inf }
 0x464   : > { %1327 = vmax.xlane.f32.xlu0 %v1326_v39 }
 0x466   : > { %1333 = vmax.xlane.f32.xlu1 %v1332_v41 }
 0x477   : > { %1361 = vrot.lane.b32.xlu1 %v3432_v23, %s3007_s19 }
 0x47a   : > { %1408 = vrot.lane.b32.xlu0 %v3430_v22, %s3007_s19  ;;  %s3891_s19 = sld [smem:[#allocation29_spill]] }
 0x4eb   : > { %v1331_v30 = vpop.xlane.xlu1 %1330 }
 0x4ec   : > { %v1337_v42 = vsub.f32 %v1317_v26, %v1331_v30 }
 0x4ee   : > { %v1343_v40 = vmul.f32 1.442695, %v1337_v42  ;;  %v2467_v42 = vld [vmem:[%s3885_s0] ss:$0 sm:$0xff] }
 0x4ef   : > { %v1325_v43 = vpop.xlane.xlu1 %1324 }
 0x4f0   : > { %v1335_v44 = vsub.f32 %v1266_v32, %v1325_v43 }
 0x4f1   : > { %v1328_v45 = vpop.xlane.xlu0 %1327 }
 0x4f2   : > { %v1339_v46 = vmul.f32 1.442695, %v1335_v44  ;;  %v1336_v47 = vsub.f32 %v1269_v36, %v1328_v45 }
 0x4f3   : > { %v1334_v48 = vpop.xlane.xlu1 %1333 }
 0x4f4   : > { %2762 = vpow2.f32 %v1339_v46  ;;  %v1341_v49 = vmul.f32 1.442695, %v1336_v47  ;;  %v1338_v50 = vsub.f32 %v1320_v35, %v1334_v48 }
 0x4f5   : > { %2764 = vpow2.f32 %v1343_v40  ;;  %v1409_v51 = vpop.permute.xlu0 %1408 }
 0x4f6   : > { %2766 = vpow2.f32 %v1341_v49  ;;  %v1345_v52 = vmul.f32 1.442695, %v1338_v50  ;;  %2587 = vmatpush3.bf16.msra.mxu0 %v1409_v51 }
 0x4f7   : > { %v1362_v23 = vpop.permute.xlu1 %1361  ;;  %2635 = vmatprep.subr.bf16.mxu0 %v3407_v9 }
 0x4f8   : > { %2768 = vpow2.f32 %v1345_v52  ;;  %2581 = vmatpush3.bf16.msra.mxu1 %v1362_v23 }
 0x4fe   : > { %v2763_v22 = vpop.eup %2762 }
 0x4ff   : > { %v2765_v53 = vpop.eup %2764  ;;  %v1347_v54 = vsel %vm983_vm3, %v2763_v22, 0.0 }
 0x500   : > { %v2767_v55 = vpop.eup %2766  ;;  %1348 = vadd.xlane.f32.xlu1 %v1347_v54  ;;  %v1353_v59 = vsel %vm983_vm3, %v2765_v53, 0.0 }
 0x501   : > { %v1350_v56 = vsel %vm983_vm3, %v2767_v55, 0.0  ;;  %v1359_v57 = vpack.c.bf16 %v2767_v55, %v2763_v22 }
 0x502   : > { %v2769_v58 = vpop.eup %2768  ;;  %1351 = vadd.xlane.f32.xlu0 %v1350_v56 }
 0x503   : > { %2583 = vmatmul.mubr.msk.bf16.vlgmr.msra.gmra.mrb[16].mxu1 %vm983_vm3, %v1359_v57  ;;  %v1360_v60 = vpack.c.bf16 %v2769_v58, %v2765_v53  ;;  %v1356_v63 = vsel %vm983_vm3, %v2769_v58, 0.0 }
 0x504   : > { %1354 = vadd.xlane.f32.xlu1 %v1353_v59 }
 0x505   : > { %2589 = vmatmul.mubr.msk.bf16.vlgmr.msra.gmra.mrb[12].mxu0 %vm983_vm3, %v1360_v60 }
 0x506   : > { %1357 = vadd.xlane.f32.xlu0 %v1356_v63  ;;  %2637 = vmatpush3.bf16.msra.mxu0 %v3407_v9  ;;  %v1642_v9 = vld [vmem:[%s3884_s5] sm:$0xff] }
 0x507   : > { %2639 = vmatprep.subr.bf16.mxu0 %v3415_v11  ;;  %2608 = vmatprep.mubr.msk.f32.mxu0 %vm920_vm1, %v1642_v9 }
 0x508   : > { %1106 = vadd.xlane.f32.xlu1 %v1105_v0 }
 0x50a   : > { %1109 = vadd.xlane.f32.xlu0 %v1108_v2  ;;  %2641 = vmatpush3.bf16.msra.mxu0 %v3415_v11  ;;  %v2746_v11 = vld [vmem:[%s3883_s27] sm:$0xff]   ;;  %s3892_s27 = scalar_lea.vmem %s3891_s19, %s3326_s26  ;;  %s2906_s19 = scalar_lea.vmem %s3733_s2, 512 }
 0x50b   : > { %2592 = vmatprep.subr.bf16.mxu1 %v2746_v11  ;;  %p2907_p12 = scmp.ne.s32.totalorder %s3733_s2, %s2906_s19 }
 0x50c   : > { %1112 = vadd.xlane.f32.xlu1 %v1111_v4  ;;  %2593 = vmatpush3.bf16.msra.mxu1 %v2746_v11 }
 0x50d   : > { %2609 = vmatmul.mubr.msk.f32.vlgmr.msra.gmra.mrb[16].mxu0 %vm920_vm1, %v1643_v1  ;;  %2594 = vmatprep.subr.bf16.mxu1 %v2747_v14 }
 0x50e   : > { %1115 = vadd.xlane.f32.xlu0 %v1114_v5  ;;  %2611 = vmatprep.mubr.msk.f32.mxu0 %vm920_vm1, %v1644_v16  ;;  %v2456_v16 = vld [vmem:[%s3886_s20] ss:$0 sm:$0xff] }
 0x510   : > { %2595 = vmatpush3.bf16.msra.mxu1 %v2747_v14 }
 0x511   : > { %2612 = vmatmul.mubr.msk.f32.gmra.mrb[18].mxu0 %vm920_vm1, %v1645_v25 }
 0x58d   : > { %v1349_v61 = vpop.xlane.xlu1 %1348 }
 0x58e   : > { %2770 = vrcp.f32 %v1349_v61 }
 0x58f   : > { %v1352_v3 = vpop.xlane.xlu0 %1351 }
 0x590   : > { %2772 = vrcp.f32 %v1352_v3 }
 0x591   : > { %v1355_v62 = vpop.xlane.xlu1 %1354 }
 0x592   : > { %2774 = vrcp.f32 %v1355_v62 }
 0x593   : > { %v1358_v13 = vpop.xlane.xlu0 %1357 }
 0x594   : > { %2776 = vrcp.f32 %v1358_v13 }
 0x595   : > { %v1107_v23 = vpop.xlane.xlu1 %1106 }
 0x596   : > { %2778 = vrcp.f32 %v1107_v23 }
 0x597   : > { %v1110_v22 = vpop.xlane.xlu0 %1109 }
 0x598   : > { %v2771_v20 = vpop.eup %2770  ;;  %2780 = vrcp.f32 %v1110_v22 }
 0x599   : > { %v1113_v53 = vpop.xlane.xlu1 %1112 }
 0x59a   : > { %v2773_v26 = vpop.eup %2772  ;;  %2782 = vrcp.f32 %v1113_v53 }
 0x59b   : > { %v1116_v54 = vpop.xlane.xlu0 %1115 }
 0x59c   : > { %v2775_v29 = vpop.eup %2774  ;;  %2784 = vrcp.f32 %v1116_v54 }
 0x59e   : > { %v2777_v34 = vpop.eup %2776 }
 0x5a0   : > { %v2779_v55 = vpop.eup %2778 }
 0x5a1   : > { %v1217_v60 = vmul.f32 %v2779_v55, %v3502_v19 }
 0x5a2   : > { %v2781_v56 = vpop.eup %2780 }
 0x5a3   : > { %v1218_v63 = vmul.f32 %v2781_v56, %v3504_v21 }
 0x5a4   : > { %v2783_v57 = vpop.eup %2782 }
 0x5a5   : > { %v1219_v4 = vmul.f32 %v2783_v57, %v3498_v15 }
 0x5a6   : > { %v2785_v58 = vpop.eup %2784 }
 0x5a7   : > { %v1220_v5 = vmul.f32 %v2785_v58, %v3500_v17 }
 0x5d6   : > { %v1401_v18 = vpop.f32.mrb[16].mxu1 }
 0x5d7   : > { %v2584_v24 = vpop.f32.mrb[17].mxu1  ;;  %v1459_v12 = vmul.f32 %v2771_v20, %v1401_v18 }
 0x5d8   : > { %v1404_v27 = vpop.f32.mrb[18].mxu1  ;;  %v1448_v28 = vpop.f32.mrb[12].mxu0 }
 0x5d9   : > { %v1460_v31 = vmul.f32 %v2773_v26, %v1404_v27  ;;  %v2585_v32 = vpop.f32.mrb[19].mxu1  ;;  %v2590_v33 = vpop.f32.mrb[13].mxu0  ;;  %v1461_v37 = vmul.f32 %v2775_v29, %v1448_v28 }
 0x5da   : > { %v1451_v35 = vpop.f32.mrb[14].mxu0 }
 0x5db   : > { %v2734_v36 = vpack.i.bf16 %v1460_v31, %v1459_v12  ;;  %v1462_v38 = vmul.f32 %v2777_v34, %v1451_v35  ;;  %v2591_v39 = vpop.f32.mrb[15].mxu0 }
 0x5dd   : > { %v2739_v41 = vpack.i.bf16 %v1462_v38, %v1461_v37  ;;  %2735 = vrot.lane.b32.xlu1 %v2734_v36, %s3008_s14 }
 0x5df   : > { %2740 = vrot.lane.b32.xlu0 %v2739_v41, %s3008_s14  ;;  %s3889_s14 = sld [smem:[#allocation30_spill]] }
 0x5e0   : > { %v2610_v30 = vpop.f32.mrb[16].mxu0 }
 0x5e1   : > { %v1744_v43 = vsub.f32 %v3401_v7, %v2610_v30  ;;  %v1724_v44 = vpop.f32.mrb[17].mxu0 }
 0x5e2   : > { %v1743_v40 = vsub.f32 %v3399_v6, %v1724_v44 }
 0x5e3   : > { %v1755_v45 = vmul.f32 %v2467_v42, %v1744_v43 }
 0x5e4   : > { %v1754_v46 = vmul.f32 %v2467_v42, %v1743_v40  ;;  %v2613_v15 = vpop.f32.mrb[18].mxu0 }
 0x5e5   : > { %v1759_v47 = vadd.f32 %v2610_v30, %v1755_v45  ;;  %v1734_v14 = vpop.f32.mrb[19].mxu0  ;;  %v1746_v18 = vsub.f32 %v3409_v10, %v2613_v15  ;;  %s3890_s23 = scalar_lea.vmem %s3889_s14, %s3326_s26  ;;  %s2493_s26 = sshll.u32 %s2984_s30, 9 }
 0x5e6   : > { %v1758_v48 = vadd.f32 %v1754_v46, %v1724_v44  ;;  %v1745_v17 = vsub.f32 %v3403_v8, %v1734_v14  ;;  %s3731_s0 = scalar_lea.hbm %s3898_s12, %s2493_s26 }
 0x5e7   : > { %v3560_v49 = vadd.f32 %v1759_v47, %v3401_v7  ;;  %v1757_v12 = vmul.f32 %v2467_v42, %v1746_v18 }
 0x5e8   : > { %v3563_v50 = vadd.f32 %v1758_v48, %v3399_v6  ;;  %v1756_v27 = vmul.f32 %v2467_v42, %v1745_v17 }
 0x5e9   : > { %v1771_v51 = vsel %vm920_vm1, %v3560_v49, 0.0  ;;  %v1761_v43 = vadd.f32 %v2613_v15, %v1757_v12 }
 0x5ea   : > { %v1768_v52 = vsel %vm920_vm1, %v3563_v50, 0.0  ;;  %v1760_v37 = vadd.f32 %v1756_v27, %v1734_v14 }
 0x5eb   : > { %v1765_v48 = vadd.f32 %v1761_v43, %v3409_v10 }
 0x5ec   : > { %v1764_v46 = vadd.f32 %v1760_v37, %v3403_v8 }
 0x5fe   : > { %1772 = vadd.xlane.f32.xlu0 %v1771_v51  ;;  %v1774_v51 = vsel %vm920_vm1, %v1764_v46, 0.0 }
 0x601   : > { %1769 = vadd.xlane.f32.xlu1 %v1768_v52 }
 0x64f   : > { %v2736_v59 = vpop.permute.xlu1 %2735 }
 0x650   : > { %v2738_v0 = vunpack.i.h.bf16 %v2736_v59  ;;  %v2737_v2 = vunpack.i.l.bf16 %v2736_v59 }
 0x651   : > { %v2741_v9 = vpop.permute.xlu0 %2740 }
 0x652   : > { %v1480_v1 = vsel %vm983_vm3, %v1218_v63, %v2738_v0  ;;  %v1479_v11 = vsel %vm983_vm3, %v1217_v60, %v2737_v2  ;;  %v2743_v61 = vunpack.i.h.bf16 %v2741_v9  ;;  %v2742_v3 = vunpack.i.l.bf16 %v2741_v9 }
 0x653   : > { %v1483_v62 = vpack.c.bf16 %v1480_v1, %v1479_v11 }
 0x654   : > { %v1482_v13 = vsel %vm983_vm3, %v1220_v5, %v2743_v61  ;;  %v1481_v19 = vsel %vm983_vm3, %v1219_v4, %v2742_v3 }
 0x655   : > { %v1484_v21 = vpack.c.bf16 %v1482_v13, %v1481_v19  ;;  %2596 = vmatprep.mubr.msk.bf16.mxu1 %vm920_vm1, %v1483_v62 }
 0x657   : > { %2597 = vmatmul.mubr.msk.bf16.vlgmr.msra.gmra.mrb[20].mxu1 %vm920_vm1, %v1484_v21 }
 0x68b   : > { %v1773_v34 = vpop.xlane.xlu0 %1772 }
 0x68c   : > { %v1781_v30 = vmul.f32 0.03125, %v1773_v34 }
 0x68e   : > { %v1770_v24 = vpop.xlane.xlu1 %1769  ;;  %v3598_v47 = vsub.f32 %v3560_v49, %v1781_v30 }
 0x68f   : > { %v1780_v35 = vmul.f32 0.03125, %v1770_v24  ;;  %v2749_v24 = vld [vmem:[%s3382_s29 + $0x8] sm:$0xff]  }
 0x691   : > { %v3593_v40 = vsub.f32 %v3563_v50, %v1780_v35  ;;  %v1777_v50 = vsel %vm920_vm1, %v1765_v48, 0.0 }
 0x72a   : > { %v2598_v20 = vpop.f32.mrb[20].mxu1 }
 0x72b   : > { %v1557_v25 = vadd.f32 %v2598_v20, %v2456_v16  ;;  %v1548_v26 = vpop.f32.mrb[21].mxu1  ;;  %v2748_v20 = vld [vmem:[%s3382_s29] sm:$0xff]  }
 0x72c   : > { %v1549_v28 = vadd.f32 %v2456_v16, %v1548_v26  ;;  %v2599_v29 = vpop.f32.mrb[22].mxu1  ;;  %2614 = vmatprep.subr.bf16.mxu1 %v2748_v20 }
 0x72d   : > { %v1560_v31 = vadd.f32 %v2599_v29, %v2456_v16  ;;  %v1551_v32 = vpop.f32.mrb[23].mxu1  ;;  %v1565_v33 = vadd.f32 %v1557_v25, %v3403_v8  ;;  %v1789_v8 = vmul.f32 %v3598_v47, %v3598_v47  ;;  %2615 = vmatpush3.bf16.msra.mxu1 %v2748_v20 }
 0x72e   : > { %v1552_v36 = vadd.f32 %v2456_v16, %v1551_v32  ;;  %v1563_v41 = vadd.f32 %v1549_v28, %v3399_v6  ;;  %2616 = vmatprep.subr.bf16.mxu1 %v2749_v24 }
 0x72f   : > { %v1575_v38 = vsel %vm920_vm1, %v1565_v33, 0.0  ;;  %v1566_v39 = vadd.f32 %v1560_v31, %v3409_v10  ;;  %v1795_v52 = vsel %vm920_vm1, %v1789_v8, 0.0 }
 0x730   : > { %1576 = vadd.xlane.f32.xlu1 %v1575_v38  ;;  %v1564_v42 = vadd.f32 %v1552_v36, %v3401_v7  ;;  %v1569_v45 = vsel %vm920_vm1, %v1563_v41, 0.0  ;;  %v1788_v7 = vmul.f32 %v3593_v40, %v3593_v40 }
 0x731   : > { %v1578_v44 = vsel %vm920_vm1, %v1566_v39, 0.0  ;;  %2617 = vmatpush3.bf16.msra.mxu1 %v2749_v24 }
 0x732   : > { %1579 = vadd.xlane.f32.xlu0 %v1578_v44  ;;  %v1572_v6 = vsel %vm920_vm1, %v1564_v42, 0.0  ;;  %v1792_v49 = vsel %vm920_vm1, %v1788_v7, 0.0 }
 0x734   : > { %1570 = vadd.xlane.f32.xlu1 %v1569_v45 }
 0x736   : > { %1573 = vadd.xlane.f32.xlu0 %v1572_v6 }
 0x738   : > { %1775 = vadd.xlane.f32.xlu1 %v1774_v51 }
 0x73a   : > { %1778 = vadd.xlane.f32.xlu0 %v1777_v50 }
 0x73c   : > { %1793 = vadd.xlane.f32.xlu1 %v1792_v49 }
 0x73e   : > { %1796 = vadd.xlane.f32.xlu0 %v1795_v52  ;;  %v2468_v52 = vld [vmem:[%s3887_s1] ss:$0 sm:$0xff] }
 0x7bd   : > { %v1577_v10 = vpop.xlane.xlu1 %1576 }
 0x7be   : > { %v1584_v23 = vmul.f32 0.03125, %v1577_v10 }
 0x7bf   : > { %v1580_v22 = vpop.xlane.xlu0 %1579 }
 0x7c0   : > { %v3610_v53 = vsub.f32 %v1565_v33, %v1584_v23  ;;  %v1585_v54 = vmul.f32 0.03125, %v1580_v22 }
 0x7c1   : > { %v1571_v55 = vpop.xlane.xlu1 %1570 }
 0x7c2   : > { %v3612_v56 = vsub.f32 %v1566_v39, %v1585_v54  ;;  %v1582_v57 = vmul.f32 0.03125, %v1571_v55  ;;  %v1592_v58 = vmul.f32 %v3610_v53, %v3610_v53 }
 0x7c3   : > { %v1574_v59 = vpop.xlane.xlu0 %1573 }
 0x7c4   : > { %v3616_v60 = vsub.f32 %v1563_v41, %v1582_v57  ;;  %v1583_v63 = vmul.f32 0.03125, %v1574_v59  ;;  %v1600_v0 = vsel %vm920_vm1, %v1592_v58, 0.0  ;;  %v1593_v2 = vmul.f32 %v3612_v56, %v3612_v56  ;;  %v2469_v58 = vld [vmem:[%s3890_s23] ss:$0 sm:$0xff] }
 0x7c5   : > { %1601 = vadd.xlane.f32.xlu1 %v1600_v0  ;;  %v1776_v4 = vpop.xlane.xlu1 %1775 }
 0x7c6   : > { %v3621_v5 = vsub.f32 %v1564_v42, %v1583_v63  ;;  %v1782_v9 = vmul.f32 0.03125, %v1776_v4  ;;  %v1603_v1 = vsel %vm920_vm1, %v1593_v2, 0.0  ;;  %v1590_v11 = vmul.f32 %v3616_v60, %v3616_v60  ;;  %v2462_v4 = vld [vmem:[%s3892_s27] ss:$0 sm:$0xff]  ;;  %s3009_s27 = smov [#allocation9]  }
 0x7c7   : > { %1604 = vadd.xlane.f32.xlu0 %v1603_v1  ;;  %v1779_v61 = vpop.xlane.xlu0 %1778  ;;  %s2910_s20 = sshll.u32 %s3009_s27, 4  ;;  %s2911_s20 = int_to_ptr.vmem [resolvable:$false] %s2910_s20 }
 0x7c8   : > { %v3626_v3 = vsub.f32 %v1764_v46, %v1782_v9  ;;  %v1783_v62 = vmul.f32 0.03125, %v1779_v61  ;;  %v1594_v13 = vsel %vm920_vm1, %v1590_v11, 0.0  ;;  %v1591_v19 = vmul.f32 %v3621_v5, %v3621_v5  ;;  %s2912_s29 = scalar_lea.vmem %s2911_s20, 1024  ;;  %p2913_p5 = scmp.lt.s32.totalorder %s3733_s2, %s2911_s20 }
 0x7c9   : > { %1595 = vadd.xlane.f32.xlu1 %v1594_v13  ;;  %v1794_v25 = vpop.xlane.xlu1 %1793  ;;  %p2914_p11 = scmp.lt.s32.totalorder %s2912_s29, %s2906_s19 }
 0x7ca   : > { %v3631_v21 = vsub.f32 %v1765_v48, %v1783_v62  ;;  %v1597_v15 = vsel %vm920_vm1, %v1591_v19, 0.0  ;;  %v1790_v14 = vmul.f32 %v3626_v3, %v3626_v3  ;;  %v1804_v27 = vmul.f32 0.03125, %v1794_v25 }
 0x7cb   : > { %1598 = vadd.xlane.f32.xlu0 %v1597_v15  ;;  %v1797_v26 = vpop.xlane.xlu0 %1796  ;;  %p2915_p9 = por %p2914_p11, %p2913_p5 }
 0x7cc   : > { %v1798_v17 = vsel %vm920_vm1, %v1790_v14, 0.0  ;;  %v1791_v16 = vmul.f32 %v3631_v21, %v3631_v21  ;;  %v1805_v28 = vmul.f32 0.03125, %v1797_v26  ;;  %v1808_v29 = vadd.f32 1e-12, %v1804_v27 }
 0x7cd   : > { %1799 = vadd.xlane.f32.xlu1 %v1798_v17 }
 0x7ce   : > { %v1801_v18 = vsel %vm920_vm1, %v1791_v16, 0.0  ;;  %v1809_v12 = vadd.f32 1e-12, %v1805_v28  ;;  %2786 = vrsqrt.f32 %v1808_v29 }
 0x7cf   : > { %1802 = vadd.xlane.f32.xlu0 %v1801_v18 }
 0x7d0   : > { %2788 = vrsqrt.f32 %v1809_v12 }
 0x7d8   : > { %v2787_v46 = vpop.eup %2786 }
 0x7d9   : > { %v1816_v50 = vmul.f32 %v2787_v46, %v3593_v40  ;;  %v2461_v40 = vld [vmem:[%s3888_s24] ss:$0 sm:$0xff] }
 0x7da   : > { %v2789_v51 = vpop.eup %2788 }
 0x7db   : > { %v1817_v8 = vmul.f32 %v2789_v51, %v3598_v47  ;;  %v1826_v54 = vmul.f32 %v2468_v52, %v1816_v50 }
 0x7dd   : > { %v1827_v55 = vmul.f32 %v2468_v52, %v1817_v8  ;;  %v1836_v9 = vadd.f32 %v2469_v58, %v1826_v54 }
 0x7df   : > { %v1840_v14 = vmul.f32 0.5, %v1836_v9 }
 0x852   : > { %v1602_v31 = vpop.xlane.xlu1 %1601 }
 0x853   : > { %v1608_v32 = vmul.f32 0.03125, %v1602_v31 }
 0x854   : > { %v1605_v33 = vpop.xlane.xlu0 %1604 }
 0x855   : > { %v1612_v34 = vadd.f32 1e-12, %v1608_v32  ;;  %v1609_v35 = vmul.f32 0.03125, %v1605_v33 }
 0x856   : > { %v1596_v36 = vpop.xlane.xlu1 %1595 }
 0x857   : > { %v1613_v37 = vadd.f32 1e-12, %v1609_v35  ;;  %v1606_v38 = vmul.f32 0.03125, %v1596_v36  ;;  %2790 = vrsqrt.f32 %v1612_v34  ;;  %v2750_v35 = vld [vmem:[%s3372_s17] sm:$0xff]   ;;  %v2751_v36 = vld [vmem:[%s3372_s17 + $0x8] sm:$0xff]  }
 0x858   : > { %v1599_v39 = vpop.xlane.xlu0 %1598  ;;  %2622 = vmatprep.subr.bf16.mxu0 %v2750_v35 }
 0x859   : > { %2792 = vrsqrt.f32 %v1613_v37  ;;  %v1610_v41 = vadd.f32 1e-12, %v1606_v38  ;;  %v1607_v30 = vmul.f32 0.03125, %v1599_v39  ;;  %2623 = vmatpush3.bf16.msra.mxu0 %v2750_v35  ;;  %v2752_v37 = vld [vmem:[%s3372_s17 + $0x10] sm:$0xff]   ;;  %v2753_v38 = vld [vmem:[%s3372_s17 + $0x18] sm:$0xff]  }
 0x85a   : > { %v1800_v43 = vpop.xlane.xlu1 %1799  ;;  %2624 = vmatprep.subr.bf16.mxu0 %v2751_v36  ;;  %v2470_v39 = vld [vmem:[%s861_s28] ss:$0 sm:$0xff] }
 0x85b   : > { %2794 = vrsqrt.f32 %v1610_v41  ;;  %v1611_v44 = vadd.f32 1e-12, %v1607_v30  ;;  %v1806_v42 = vmul.f32 0.03125, %v1800_v43 }
 0x85c   : > { %v1803_v45 = vpop.xlane.xlu0 %1802 }
 0x85d   : > { %2796 = vrsqrt.f32 %v1611_v44  ;;  %v1810_v6 = vadd.f32 1e-12, %v1806_v42  ;;  %v1807_v48 = vmul.f32 0.03125, %v1803_v45  ;;  %2625 = vmatpush3.bf16.msra.mxu0 %v2751_v36 }
 0x85e   : > { %2626 = vmatprep.subr.bf16.mxu0 %v2752_v37 }
 0x85f   : > { %2798 = vrsqrt.f32 %v1810_v6  ;;  %v1811_v7 = vadd.f32 1e-12, %v1807_v48 }
 0x861   : > { %2800 = vrsqrt.f32 %v1811_v7  ;;  %v2791_v49 = vpop.eup %2790  ;;  %2627 = vmatpush3.bf16.msra.mxu0 %v2752_v37 }
 0x862   : > { %v1620_v22 = vmul.f32 %v2791_v49, %v3610_v53  ;;  %2628 = vmatprep.subr.bf16.mxu0 %v2753_v38 }
 0x863   : > { %v2793_v10 = vpop.eup %2792 }
 0x864   : > { %v1621_v47 = vmul.f32 %v2793_v10, %v3612_v56  ;;  %v1630_v2 = vmul.f32 %v2461_v40, %v1620_v22  ;;  %v1837_v56 = vadd.f32 %v2469_v58, %v1827_v55 }
 0x865   : > { %v2795_v23 = vpop.eup %2794  ;;  %2629 = vmatpush3.bf16.msra.mxu0 %v2753_v38 }
 0x866   : > { %v1618_v57 = vmul.f32 %v2795_v23, %v3616_v60  ;;  %v1631_v1 = vmul.f32 %v2461_v40, %v1621_v47  ;;  %v1841_v17 = vmul.f32 0.5, %v1837_v56  ;;  %v1640_v16 = vadd.f32 %v2462_v4, %v1630_v2 }
 0x867   : > { %v2797_v59 = vpop.eup %2796 }
 0x868   : > { %v1619_v63 = vmul.f32 %v2797_v59, %v3621_v5  ;;  %v1628_v53 = vmul.f32 %v2461_v40, %v1618_v57  ;;  %v1641_v24 = vadd.f32 %v2462_v4, %v1631_v1  ;;  %v1846_v12 = vmul.f32 0.5, %v1640_v16 }
 0x869   : > { %v2799_v0 = vpop.eup %2798 }
 0x86a   : > { %v1818_v60 = vmul.f32 %v2799_v0, %v3626_v3  ;;  %v1629_v11 = vmul.f32 %v2461_v40, %v1619_v63  ;;  %v1638_v61 = vadd.f32 %v2462_v4, %v1628_v53  ;;  %v1847_v31 = vmul.f32 0.5, %v1641_v24  ;;  %v2475_v24 = vld [vmem:[%s869_s25] ss:$0 sm:$0xff] }
 0x86b   : > { %v2801_v62 = vpop.eup %2800 }
 0x86c   : > { %v1828_v13 = vmul.f32 %v2468_v52, %v1818_v60  ;;  %v1819_v19 = vmul.f32 %v2801_v62, %v3631_v21  ;;  %v1639_v5 = vadd.f32 %v2462_v4, %v1629_v11  ;;  %v1844_v15 = vmul.f32 0.5, %v1638_v61 }
 0x86e   : > { %v1829_v18 = vmul.f32 %v2468_v52, %v1819_v19  ;;  %v1845_v20 = vmul.f32 0.5, %v1639_v5  ;;  %v1838_v25 = vadd.f32 %v2469_v58, %v1828_v13  ;;  %v3670_v26 = vadd.f32 %v1844_v15, %v1840_v14 }
 0x870   : > { %v3672_v3 = vadd.f32 %v1845_v20, %v1841_v17  ;;  %v1839_v27 = vadd.f32 %v2469_v58, %v1829_v18  ;;  %v1842_v28 = vmul.f32 0.5, %v1838_v25 }
 0x872   : > { %v1852_v21 = vpack.c.bf16 %v3672_v3, %v3670_v26  ;;  %v1843_v29 = vmul.f32 0.5, %v1839_v27  ;;  %v3677_v32 = vadd.f32 %v1846_v12, %v1842_v28 }
 0x874   : > { %2618 = vmatprep.mubr.msk.bf16.mxu1 %vm920_vm1, %v1852_v21  ;;  %v3679_v33 = vadd.f32 %v1847_v31, %v1843_v29 }
 0x876   : > { %v1853_v34 = vpack.c.bf16 %v3679_v33, %v3677_v32 }
 0x878   : > { %2619 = vmatmul.mubr.msk.bf16.vlgmr.msra.gmra.mrb[24].mxu1 %vm920_vm1, %v1853_v34 }
 0x94b   : > { %v2620_v41 = vpop.f32.mrb[24].mxu1 }
 0x94c   : > { %v1926_v30 = vadd.f32 %v2620_v41, %v2470_v39  ;;  %v1917_v43 = vpop.f32.mrb[25].mxu1 }
 0x94d   : > { %v1918_v44 = vadd.f32 %v2470_v39, %v1917_v43  ;;  %v2621_v42 = vpop.f32.mrb[26].mxu1 }
 0x94e   : > { %v1938_v45 = vmul.f32 0.044715, %v1926_v30  ;;  %v1929_v46 = vadd.f32 %v2621_v42, %v2470_v39  ;;  %v1920_v6 = vpop.f32.mrb[27].mxu1  ;;  %v1934_v11 = vmul.f32 0.5, %v1926_v30 }
 0x94f   : > { %v1936_v48 = vmul.f32 0.044715, %v1918_v44  ;;  %v1921_v51 = vadd.f32 %v2470_v39, %v1920_v6  ;;  %v1932_v13 = vmul.f32 0.5, %v1918_v44 }
 0x950   : > { %v1942_v7 = vmul.f32 %v1938_v45, %v1926_v30  ;;  %v1939_v50 = vmul.f32 0.044715, %v1929_v46  ;;  %v1935_v61 = vmul.f32 0.5, %v1929_v46 }
 0x951   : > { %v1940_v8 = vmul.f32 %v1936_v48, %v1918_v44  ;;  %v1937_v49 = vmul.f32 0.044715, %v1921_v51  ;;  %v1933_v19 = vmul.f32 0.5, %v1921_v51 }
 0x952   : > { %v1946_v52 = vmul.f32 %v1942_v7, %v1926_v30  ;;  %v1943_v10 = vmul.f32 %v1939_v50, %v1929_v46 }
 0x953   : > { %v1944_v23 = vmul.f32 %v1940_v8, %v1918_v44  ;;  %v1941_v22 = vmul.f32 %v1937_v49, %v1921_v51 }
 0x954   : > { %v1950_v54 = vadd.f32 %v1946_v52, %v1926_v30  ;;  %v1947_v55 = vmul.f32 %v1943_v10, %v1929_v46 }
 0x955   : > { %v1948_v40 = vadd.f32 %v1944_v23, %v1918_v44  ;;  %v1945_v47 = vmul.f32 %v1941_v22, %v1921_v51 }
 0x956   : > { %v1954_v57 = vmul.f32 0.7978846, %v1950_v54  ;;  %v1951_v58 = vadd.f32 %v1947_v55, %v1929_v46 }
 0x957   : > { %v1952_v59 = vmul.f32 0.7978846, %v1948_v40  ;;  %v1949_v63 = vadd.f32 %v1945_v47, %v1921_v51 }
 0x958   : > { %2802 = vtanh.f32 %v1954_v57  ;;  %v1955_v53 = vmul.f32 0.7978846, %v1951_v58 }
 0x959   : > { %2804 = vtanh.f32 %v1952_v59  ;;  %v1953_v0 = vmul.f32 0.7978846, %v1949_v63 }
 0x95a   : > { %2806 = vtanh.f32 %v1955_v53 }
 0x95b   : > { %2808 = vtanh.f32 %v1953_v0 }
 0x962   : > { %v2803_v2 = vpop.eup %2802 }
 0x963   : > { %v2805_v4 = vpop.eup %2804  ;;  %v1962_v9 = vadd.f32 1.0, %v2803_v2 }
 0x964   : > { %v2807_v56 = vpop.eup %2806  ;;  %v1960_v1 = vadd.f32 1.0, %v2805_v4 }
 0x965   : > { %v2809_v60 = vpop.eup %2808  ;;  %v1963_v62 = vadd.f32 1.0, %v2807_v56  ;;  %v1966_v15 = vmul.f32 %v1962_v9, %v1934_v11 }
 0x966   : > { %v1961_v5 = vadd.f32 1.0, %v2809_v60  ;;  %v1964_v17 = vmul.f32 %v1960_v1, %v1932_v13  ;;  %v2482_v1 = vld [vmem:[%s872_s8] ss:$0 sm:$0xff]  ;;  %s3896_s8 = sld [smem:[#allocation22_spill]] }
 0x967   : > { %v1967_v14 = vmul.f32 %v1963_v62, %v1935_v61  ;;  %v2483_v61 = vld [vmem:[%s875_s11] ss:$0 sm:$0xff]  ;;  %s3897_s11 = sld [smem:[#allocation20_spill]] }
 0x968   : > { %v1965_v16 = vmul.f32 %v1961_v5, %v1933_v19 }
 0x969   : > { %v1969_v18 = vpack.c.bf16 %v1967_v14, %v1966_v15 }
 0x96a   : > { %v1968_v20 = vpack.c.bf16 %v1965_v16, %v1964_v17 }
 0x96c   : > { %2630 = vmatprep.mubr.msk.bf16.mxu0 %vm2009_vm4, %v1968_v20  ;;  %s2152_s30 = scalar_lea.sflag [#allocation5], %s3896_s8 }
 0x96d   : > { %2631 = vmatmul.mubr.msk.bf16.vlgmr.msra.gmra.mrb[20].mxu0 %vm2009_vm4, %v1969_v18  ;;  %p3899_p0 = scmp.ne.s32.totalorder %s3897_s11, 0 }
 0x96f   : > { %p2908_p3 = pnand %p2907_p12, %p3899_p0 }
 0x971   : > { %p2909_p4 = pneg %p2908_p3 }
 0x973   : > { %p2916_p8 = pnand %p2915_p9, %p2909_p4 }
 0xa40   : > { %v2632_v25 = vpop.f32.mrb[20].mxu0 }
 0xa41   : > { %v2050_v27 = vpop.f32.mrb[21].mxu0  ;;  %v2059_v28 = vadd.f32 %v2632_v25, %v2475_v24 }
 0xa42   : > { %v2051_v21 = vadd.f32 %v2475_v24, %v2050_v27  ;;  %v2633_v29 = vpop.f32.mrb[22].mxu0 }
 0xa43   : > { %v2053_v12 = vpop.f32.mrb[23].mxu0  ;;  %v2062_v31 = vadd.f32 %v2633_v29, %v2475_v24  ;;  %v2067_v38 = vadd.f32 %v2059_v28, %v3677_v32 }
 0xa44   : > { %v2054_v34 = vadd.f32 %v2475_v24, %v2053_v12  ;;  %v2065_v35 = vadd.f32 %v2051_v21, %v3670_v26 }
 0xa45   : > { %v2068_v41 = vadd.f32 %v2062_v31, %v3679_v33  ;;  %v2077_v30 = vsel %vm920_vm1, %v2067_v38, 0.0 }
 0xa46   : > { %v2071_v36 = vsel %vm920_vm1, %v2065_v35, 0.0  ;;  %v2066_v37 = vadd.f32 %v2054_v34, %v3672_v3 }
 0xa47   : > { %2072 = vadd.xlane.f32.xlu1 %v2071_v36  ;;  %v2080_v43 = vsel %vm920_vm1, %v2068_v41, 0.0 }
 0xa48   : > { %v2074_v39 = vsel %vm920_vm1, %v2066_v37, 0.0 }
 0xa49   : > { %2075 = vadd.xlane.f32.xlu0 %v2074_v39 }
 0xa4b   : > { %2078 = vadd.xlane.f32.xlu1 %v2077_v30 }
 0xa4d   : > { %2081 = vadd.xlane.f32.xlu0 %v2080_v43 }
 0xad4   : > { %v2073_v44 = vpop.xlane.xlu1 %2072 }
 0xad5   : > { %v2083_v26 = vmul.f32 0.03125, %v2073_v44 }
 0xad6   : > { %v2076_v42 = vpop.xlane.xlu0 %2075 }
 0xad7   : > { %v2087_v45 = vsub.f32 %v2065_v35, %v2083_v26  ;;  %v2084_v46 = vmul.f32 0.03125, %v2076_v42 }
 0xad8   : > { %v2079_v3 = vpop.xlane.xlu1 %2078 }
 0xad9   : > { %v2088_v6 = vsub.f32 %v2066_v37, %v2084_v46  ;;  %v2085_v32 = vmul.f32 0.03125, %v2079_v3  ;;  %v2091_v48 = vmul.f32 %v2087_v45, %v2087_v45 }
 0xada   : > { %v2082_v51 = vpop.xlane.xlu0 %2081 }
 0xadb   : > { %v2089_v7 = vsub.f32 %v2067_v38, %v2085_v32  ;;  %v2086_v50 = vmul.f32 0.03125, %v2082_v51  ;;  %v2095_v33 = vsel %vm920_vm1, %v2091_v48, 0.0  ;;  %v2092_v8 = vmul.f32 %v2088_v6, %v2088_v6 }
 0xadc   : > { %2096 = vadd.xlane.f32.xlu1 %v2095_v33 }
 0xadd   : > { %v2090_v49 = vsub.f32 %v2068_v41, %v2086_v50  ;;  %v2098_v52 = vsel %vm920_vm1, %v2092_v8, 0.0  ;;  %v2093_v10 = vmul.f32 %v2089_v7, %v2089_v7 }
 0xade   : > { %2099 = vadd.xlane.f32.xlu0 %v2098_v52 }
 0xadf   : > { %v2101_v23 = vsel %vm920_vm1, %v2093_v10, 0.0  ;;  %v2094_v22 = vmul.f32 %v2090_v49, %v2090_v49 }
 0xae0   : > { %2102 = vadd.xlane.f32.xlu1 %v2101_v23 }
 0xae1   : > { %v2104_v54 = vsel %vm920_vm1, %v2094_v22, 0.0 }
 0xae2   : > { %2105 = vadd.xlane.f32.xlu0 %v2104_v54 }
 0xb69   : > { %v2097_v55 = vpop.xlane.xlu1 %2096 }
 0xb6a   : > { %v2107_v40 = vmul.f32 0.03125, %v2097_v55 }
 0xb6b   : > { %v2100_v47 = vpop.xlane.xlu0 %2099 }
 0xb6c   : > { %v2111_v57 = vadd.f32 1e-12, %v2107_v40  ;;  %v2108_v58 = vmul.f32 0.03125, %v2100_v47 }
 0xb6d   : > { %v2103_v59 = vpop.xlane.xlu1 %2102 }
 0xb6e   : > { %2810 = vrsqrt.f32 %v2111_v57  ;;  %v2112_v63 = vadd.f32 1e-12, %v2108_v58  ;;  %v2109_v53 = vmul.f32 0.03125, %v2103_v59 }
 0xb6f   : > { %v2106_v0 = vpop.xlane.xlu0 %2105 }
 0xb70   : > { %2812 = vrsqrt.f32 %v2112_v63  ;;  %v2113_v2 = vadd.f32 1e-12, %v2109_v53  ;;  %v2110_v4 = vmul.f32 0.03125, %v2106_v0 }
 0xb72   : > { %2814 = vrsqrt.f32 %v2113_v2  ;;  %v2114_v9 = vadd.f32 1e-12, %v2110_v4 }
 0xb74   : > { %2816 = vrsqrt.f32 %v2114_v9 }
 0xb78   : > { %v2811_v56 = vpop.eup %2810 }
 0xb79   : > { %v2119_v60 = vmul.f32 %v2811_v56, %v2087_v45 }
 0xb7a   : > { %v2813_v11 = vpop.eup %2812 }
 0xb7b   : > { %v2129_v62 = vmul.f32 %v2482_v1, %v2119_v60  ;;  %v2120_v13 = vmul.f32 %v2813_v11, %v2088_v6 }
 0xb7c   : > { %v2815_v19 = vpop.eup %2814 }
 0xb7d   : > { %v2139_v5 = vadd.f32 %v2483_v61, %v2129_v62  ;;  %v2130_v15 = vmul.f32 %v2482_v1, %v2120_v13  ;;  %v2121_v14 = vmul.f32 %v2815_v19, %v2089_v7 }
 0xb7e   : > { %v2817_v17 = vpop.eup %2816 }
 0xb7f   : > { %2143 = vst.msk [vmem:[#allocation2] sm:$0xff] %vm920_vm1, %v2139_v5  ;;  %2147 = vst.msk [vmem:[%s3384_s16] sm:$0xff] %vm920_vm1, %v2139_v5  ;;  %v2140_v16 = vadd.f32 %v2483_v61, %v2130_v15  ;;  %v2131_v18 = vmul.f32 %v2482_v1, %v2121_v14  ;;  %v2122_v20 = vmul.f32 %v2817_v17, %v2090_v49 }
 0xb81   : > { %2144 = vst.msk [vmem:[#allocation2 + $0x8] sm:$0xff] %vm920_vm1, %v2140_v16  ;;  %2148 = vst.msk [vmem:[%s3384_s16 + $0x8] sm:$0xff] %vm920_vm1, %v2140_v16  ;;  %v2141_v24 = vadd.f32 %v2483_v61, %v2131_v18  ;;  %v2132_v25 = vmul.f32 %v2482_v1, %v2122_v20 }
 0xb83   : > { %2145 = vst.msk [vmem:[#allocation2 + $0x10] sm:$0xff] %vm920_vm1, %v2141_v24  ;;  %2149 = vst.msk [vmem:[%s3384_s16 + $0x10] sm:$0xff] %vm920_vm1, %v2141_v24  ;;  %v2142_v27 = vadd.f32 %v2483_v61, %v2132_v25 }
 0xb85   : > { %2146 = vst.msk [vmem:[#allocation2 + $0x18] sm:$0xff] %vm920_vm1, %v2142_v27  ;;  %2150 = vst.msk [vmem:[%s3384_s16 + $0x18] sm:$0xff] %vm920_vm1, %v2142_v27 }
 0xb86   : > { %2919 = shalt.err (!%p2916_p8)
}
 0xb87   : > { %s2920_s16 = scalar_lea.hbm %s3731_s0, 512  ;;  %s2924_s21 = scalar_lea.hbm %s3898_s12, 1024 }
 0xb88   : > { %p2921_p6 = scmp.ne.s32.totalorder %s3731_s0, %s2920_s16  ;;  %p2925_p13 = scmp.lt.u32.totalorder %s3731_s0, %s3898_s12 }
 0xb89   : > { %p2926_p10 = scmp.lt.u32.totalorder %s2924_s21, %s2920_s16  ;;  %p2928_p12 = scmp.lt.u32.totalorder %s2920_s16, %s3731_s0 }
 0xb8a   : > { %p2922_p1 = pnand %p2921_p6, %p3899_p0 }
 0xb8b   : > { %p2927_p7 = por %p2926_p10, %p2925_p13 }
 0xb8c   : > { %p2923_p2 = pneg %p2922_p1 }
 0xb8d   : > { %p2929_p3 = por %p2928_p12, %p2927_p7 }
 0xb8f   : > { %p2930_p4 = pnand %p2929_p3, %p2923_p2 }
 0xb91   : > { %2933 = shalt.err (!%p2930_p4)
}
 0xb92   : > { %s3010_s22 = smov 128   ;;  %s3011_s15 = smov 8  }
 0xb93   : > { %2650 = dma.vmem_to_hbm [thread:$0]  (%p3899_p0), %s3733_s2, 512, %s3731_s0, %s2152_s30, %s3010_s22, %s3010_s22, %s3011_s15  }
 0xb94 PF: > { %s3900_s24 = sld [smem:[#allocation13_spill]]  ;;  %s3901_s18 = sld [smem:[#allocation21_spill]] }
 0xb95   : > { %s3902_s26 = sld [smem:[#allocation17_spill]] }
 0xb9a   : > { %s2182_s14 = sand.u32 1, %s3900_s24   ;;  %p3903_p5 = scmp.ne.s32.totalorder %s3901_s18, 0 }
 0xb9b   : > { %p3904_p11 = scmp.ge.s32.totalorder %s3902_s26, 2  ;;  %s2183_s23 = scalar_lea.sflag [#allocation5], %s2182_s14 }
 0xb9d   : > { %p2664_p9 = pnand %p3904_p11, %p3903_p5 }
 0xb9f   : > { %2967 = dma.done.wait (!%p2664_p9), %s2183_s23, 512  }
 0xba0   : > { %2969 = vsyncadd (!%p2664_p9), %s2183_s23, 4294966784  ;;  %s35_s19 = sadd.s32 1, %s3902_s26   ;;  %s3905_s27 = sld [smem:[#allocation14_spill]] }
 0xba1   : > { %p32_p8 = scmp.ge.s32.totalorder %s35_s19, 4   ;;  %s3906_s28 = sld [smem:[#allocation15_spill]] }
 0xba2   : > { %s3907_s29 = sld [smem:[#allocation19_spill]]  ;;  %s3908_s30 = sld [smem:[#allocation16_spill]] }
 0xba3   : > { %s3909_s0 = sld [smem:[#allocation18_spill]]  ;;  %34 = sbr.rel (!%p32_p8) target bundleno = 21 (0x15), region = 199 }
 0xbaa   :  { %2188 = vsyncpa [#allocation4], 1 }
 0xbab   :  { %2190 = vsyncpa [#allocation4 + $0x1], 1 }
 0xbac   :  { %2191 = vsyncpa [#allocation7], 1 }
 0xbad   :  { %2193 = vsyncpa [#allocation7 + $0x1], 1 }
 0xbae   :  { %2194 = vsyncpa [#allocation5], 1 }
 0xbaf   :  { %2196 = vsyncpa [#allocation5 + $0x1], 1 }

</bundles_post_ra>
